<compile_context>
chip_gen: v7x
topology: tpu7x:2x2x1
jax: 0.10.0
libtpu: 0.0.40
codegen_flags: <defaults>
</compile_context>

<pallas_src>
import jax
import jax.numpy as jnp
from jax.experimental import pallas as pl
from jax.experimental.pallas import tpu as pltpu


# ----------------------------------------------------------------------------- helpers
def _round_up(n, m):
    return ((n + m - 1) // m) * m


def _pick_tile_s(s, cap=256):
    t = max(1, min(s, cap))
    while s % t:
        t -= 1
    return t


# ------------------------------------------------------------------- kernel A: attn+GRU
def _attn_gru_kernel(
    dec_h_ref,       # (B, H)    f32
    emb_ref,         # (B, E)    f32
    enc_ref,         # (TS,B,H)  f32   one S-tile of enc_output (native (S,B,H) layout)
    w1t_ref,         # (H, H)    W1.weight^T     (compute dtype)
    b1_ref,          # (1, H)    f32
    w2t_ref,         # (H, H)    W2.weight^T
    b2_ref,          # (1, H)
    vaw_ref,         # (1, H)    va.weight (f32)
    vab_ref,         # (1, 1)    va.bias
    wih_ctx_t_ref,   # (H, 3H)   gru.weight_ih[:, :H]^T  (context part)
    wih_emb_t_ref,   # (E, 3H)   gru.weight_ih[:, H:]^T  (embedding part)
    bih_ref,         # (1, 3H)
    whh_t_ref,       # (H, 3H)   gru.weight_hh^T
    bhh_ref,         # (1, 3H)
    h_new_ref,       # out (B, H) f32
    attn_ref,        # out (B, S) f32
    q_scr,           # (B, H) f32   W1(dec_h)   (hoisted across S tiles)
    m_scr,           # (B, 1) f32   running max
    l_scr,           # (B, 1) f32   running sum
    acc_scr,         # (B, H) f32   unnormalized context accumulator
    scores_scr,      # (S, B) f32   raw scores (exact softmax for the attn output)
):
    si = pl.program_id(0)
    n_s = pl.num_programs(0)
    ts, b, h = enc_ref.shape
    wdt = w2t_ref.dtype

    @pl.when(si == 0)
    def _init():
        m_scr[...] = jnp.full(m_scr.shape, -jnp.inf, jnp.float32)
        l_scr[...] = jnp.zeros(l_scr.shape, jnp.float32)
        acc_scr[...] = jnp.zeros(acc_scr.shape, jnp.float32)
        q_scr[...] = (
            jnp.dot(dec_h_ref[...].astype(wdt), w1t_ref[...],
                    preferred_element_type=jnp.float32) + b1_ref[...])

    # -------- attention scores for this S tile: va(tanh(W1 h + W2 enc)) --------
    enc_t = enc_ref[...]                                                    # (TS,B,H) f32
    k2d = (jnp.dot(enc_t.reshape(ts * b, h).astype(wdt), w2t_ref[...],
                   preferred_element_type=jnp.float32) + b2_ref[...])       # (TS*B, H)
    e = jnp.tanh(q_scr[...][None, :, :] + k2d.reshape(ts, b, h))            # (TS,B,H)
    s_sb = jnp.sum(e * vaw_ref[...][None, :, :], axis=-1) + vab_ref[...]    # (TS,B)

    # stash raw scores so the final softmax (attention_weights output) is exact
    off = pl.multiple_of(si * ts, ts)
    scores_scr[pl.ds(off, ts), :] = s_sb

    # -------- online-softmax accumulation of the context vector --------
    s_bt = s_sb.T                                                           # (B, TS)
    m_prev = m_scr[...]
    m_new = jnp.maximum(m_prev, jnp.max(s_bt, axis=-1, keepdims=True))      # (B,1)
    alpha = jnp.exp(m_prev - m_new)                                         # (B,1)
    p_bt = jnp.exp(s_bt - m_new)                                            # (B,TS)
    l_scr[...] = alpha * l_scr[...] + jnp.sum(p_bt, axis=-1, keepdims=True)
    acc_scr[...] = alpha * acc_scr[...] + jnp.sum(p_bt.T[:, :, None] * enc_t, axis=0)
    m_scr[...] = m_new

    # -------- finalize: exact attention weights + GRU step --------
    @pl.when(si == n_s - 1)
    def _finalize():
        # exact division keeps the f32 self-test tight (see review correctness note)
        inv_l = pl.reciprocal(l_scr[...], approx=False)                     # (B,1)
        attn_ref[...] = jnp.exp(scores_scr[...].T - m_scr[...]) * inv_l     # (B,S)
        ctx = acc_scr[...] * inv_l                                          # (B,H)

        dec_h = dec_h_ref[...]
        gi = (jnp.dot(ctx.astype(wdt), wih_ctx_t_ref[...],
                      preferred_element_type=jnp.float32)
              + jnp.dot(emb_ref[...].astype(wdt), wih_emb_t_ref[...],
                        preferred_element_type=jnp.float32)
              + bih_ref[...])                                               # (B,3H)
        gh = (jnp.dot(dec_h.astype(wdt), whh_t_ref[...],
                      preferred_element_type=jnp.float32) + bhh_ref[...])   # (B,3H)

        r = jax.nn.sigmoid(gi[:, 0:h] + gh[:, 0:h])
        z = jax.nn.sigmoid(gi[:, h:2 * h] + gh[:, h:2 * h])
        n = jnp.tanh(gi[:, 2 * h:3 * h] + r * gh[:, 2 * h:3 * h])
        h_new_ref[...] = (1.0 - z) * n + z * dec_h


# ---------------------------------------------------------- kernel B: fc projection (V)
def _fc_kernel(h_ref, fct_ref, fcb_ref, out_ref):
    out_ref[...] = (jnp.dot(h_ref[...].astype(fct_ref.dtype), fct_ref[...],
                            preferred_element_type=jnp.float32) + fcb_ref[...])


# ------------------------------------------------------------------------- preparation
def prepare_params(params, hidden_units, *, compute_dtype=jnp.bfloat16, tile_v=512):
    """One-time weight prep (hoisted out of the decode loop):
    transposes, dtype cast of matmul weights, zero-padding of the fc weight to a
    lane-dense multiple of the V tile."""
    H = hidden_units
    V = params["fc_w"].shape[0]
    wdt = compute_dtype

    tile_v = max(128, _round_up(min(tile_v, _round_up(V, 128)), 128))
    v_pad = _round_up(V, tile_v)
    fct = jnp.zeros((H, v_pad), jnp.float32).at[:, :V].set(params["fc_w"].T).astype(wdt)
    fcb = jnp.zeros((1, v_pad), jnp.float32).at[:, :V].set(params["fc_b"][None, :])

    return {
        "emb_table": params["emb_table"],
        "w1t": params["w1"].T.astype(wdt), "b1": params["b1"][None, :].astype(jnp.float32),
        "w2t": params["w2"].T.astype(wdt), "b2": params["b2"][None, :].astype(jnp.float32),
        "va_w": params["va_w"].astype(jnp.float32),
        "va_b": params["va_b"][None, :].astype(jnp.float32),
        "wih_ctx_t": params["w_ih"][:, :H].T.astype(wdt),
        "wih_emb_t": params["w_ih"][:, H:].T.astype(wdt),
        "b_ih": params["b_ih"][None, :].astype(jnp.float32),
        "whh_t": params["w_hh"].T.astype(wdt),
        "b_hh": params["b_hh"][None, :].astype(jnp.float32),
        "fct": fct, "fcb": fcb,
        "vocab_size": V, "v_pad": v_pad, "tile_v": tile_v, "hidden": H,
    }


# ------------------------------------------------------------------------------ forward
def rnn_decoder_forward(x, dec_hs, enc_output, prep, *, tile_s=None):
    """x: (B,1) int32; dec_hs: (1,B,H); enc_output: (S,B,H) (native layout, no transpose)."""
    B = x.shape[0]
    S = enc_output.shape[0]
    H = dec_hs.shape[-1]
    V, v_pad, tile_v = prep["vocab_size"], prep["v_pad"], prep["tile_v"]

    if tile_s is None or S % tile_s != 0:
        tile_s = _pick_tile_s(S, 256 if tile_s is None else tile_s)
    num_s = S // tile_s

    dec_h = dec_hs[0]                                    # (B, H)
    # Embedding row gather stays in XLA glue; everything else runs in the kernels.
    emb = jnp.take(prep["emb_table"], x[:, 0], axis=0)   # (B, E)

    def full(arr):
        shp = arr.shape
        return pl.BlockSpec(shp, lambda s, _n=len(shp): (0,) * _n)

    kernel_inputs = (
        dec_h, emb, enc_output,
        prep["w1t"], prep["b1"], prep["w2t"], prep["b2"],
        prep["va_w"], prep["va_b"],
        prep["wih_ctx_t"], prep["wih_emb_t"], prep["b_ih"],
        prep["whh_t"], prep["b_hh"],
    )
    in_specs = [
        full(dec_h), full(emb),
        pl.BlockSpec((tile_s, B, H), lambda s: (s, 0, 0)),   # stream enc over S
        full(prep["w1t"]), full(prep["b1"]), full(prep["w2t"]), full(prep["b2"]),
        full(prep["va_w"]), full(prep["va_b"]),
        full(prep["wih_ctx_t"]), full(prep["wih_emb_t"]), full(prep["b_ih"]),
        full(prep["whh_t"]), full(prep["b_hh"]),
    ]
    out_specs = (
        pl.BlockSpec((B, H), lambda s: (0, 0)),
        pl.BlockSpec((B, S), lambda s: (0, 0)),
    )

    h_new, attn = pl.pallas_call(
        _attn_gru_kernel,
        out_shape=(jax.ShapeDtypeStruct((B, H), jnp.float32),
                   jax.ShapeDtypeStruct((B, S), jnp.float32)),
        grid_spec=pltpu.PrefetchScalarGridSpec(
            num_scalar_prefetch=0,
            grid=(num_s,),
            in_specs=in_specs,
            out_specs=out_specs,
            scratch_shapes=[
                pltpu.VMEM((B, H), jnp.float32),   # q = W1(dec_h) + b1
                pltpu.VMEM((B, 1), jnp.float32),   # running max
                pltpu.VMEM((B, 1), jnp.float32),   # running sum
                pltpu.VMEM((B, H), jnp.float32),   # unnormalized context
                pltpu.VMEM((S, B), jnp.float32),   # raw attention scores
            ],
        ),
        compiler_params=pltpu.CompilerParams(dimension_semantics=("arbitrary",)),
    )(*kernel_inputs)

    # fc projection, streamed/tiled over the (padded) vocab axis; independent tiles,
    # so the grid axis is "parallel" (megacore sharding on v7x).
    logits = pl.pallas_call(
        _fc_kernel,
        out_shape=jax.ShapeDtypeStruct((B, v_pad), jnp.float32),
        grid_spec=pltpu.PrefetchScalarGridSpec(
            num_scalar_prefetch=0,
            grid=(v_pad // tile_v,),
            in_specs=[
                pl.BlockSpec((B, H), lambda v: (0, 0)),
                pl.BlockSpec((H, tile_v), lambda v: (0, v)),
                pl.BlockSpec((1, tile_v), lambda v: (0, v)),
            ],
            out_specs=pl.BlockSpec((B, tile_v), lambda v: (0, v)),
        ),
        compiler_params=pltpu.CompilerParams(dimension_semantics=("parallel",)),
    )(h_new, prep["fct"], prep["fcb"])

    fc_out = logits[:, :V][:, None, :]      # (B, 1, V)
    dec_hs_new = h_new[None, :, :]          # (1, B, H)
    attention_weights = attn[:, :, None]    # (B, S, 1)
    return fc_out, dec_hs_new, attention_weights


# ------------------------------------------------------------------------ init & reference
def init_params(key, vocab_size, embedding_dim, hidden_units):
    ks = jax.random.split(key, 12)
    H, E, V = hidden_units, embedding_dim, vocab_size

    def uni(k, shape, fan_in):
        bound = 1.0 / jnp.sqrt(fan_in)
        return jax.random.uniform(k, shape, jnp.float32, -bound, bound)

    return {
        "emb_table": jax.random.normal(ks[0], (V, E), jnp.float32) * 0.1,
        "w1": uni(ks[1], (H, H), H), "b1": uni(ks[2], (H,), H),
        "w2": uni(ks[3], (H, H), H), "b2": uni(ks[4], (H,), H),
        "va_w": uni(ks[5], (1, H), H), "va_b": uni(ks[6], (1,), H),
        "w_ih": uni(ks[7], (3 * H, H + E), H), "b_ih": uni(ks[8], (3 * H,), H),
        "w_hh": uni(ks[9], (3 * H, H), H), "b_hh": uni(ks[10], (3 * H,), H),
        "fc_w": uni(ks[11], (V, H), H), "fc_b": jnp.zeros((V,), jnp.float32),
    }


def _reference(x, dec_hs, enc_output, p):
    """Pure-JAX f32 reference of the same semantics."""
    H = dec_hs.shape[-1]
    dec_h = dec_hs[0]
    enc = jnp.transpose(enc_output, (1, 0, 2))
    emb = p["emb_table"][x[:, 0]]
    q = dec_h @ p["w1"].T + p["b1"]
    k = enc @ p["w2"].T + p["b2"]
    e = jnp.tanh(q[:, None, :] + k)
    scores = jnp.einsum("bsh,h->bs", e, p["va_w"][0]) + p["va_b"][0]
    attn = jax.nn.softmax(scores, axis=-1)
    ctx = jnp.sum(attn[:, :, None] * enc, axis=1)
    inp = jnp.concatenate([ctx, emb], axis=-1)
    gi = inp @ p["w_ih"].T + p["b_ih"]
    gh = dec_h @ p["w_hh"].T + p["b_hh"]
    r = jax.nn.sigmoid(gi[:, :H] + gh[:, :H])
    z = jax.nn.sigmoid(gi[:, H:2 * H] + gh[:, H:2 * H])
    n = jnp.tanh(gi[:, 2 * H:] + r * gh[:, 2 * H:])
    h_new = (1 - z) * n + z * dec_h
    logits = h_new @ p["fc_w"].T + p["fc_b"]
    return logits[:, None, :], h_new[None], attn[:, :, None]


# ------------------------------------------------------------------------------- main
if __name__ == "__main__":
    B, S, H, E, V = 2, 8, 32, 16, 32

    key = jax.random.PRNGKey(0)
    k_par, k_x, k_h, k_enc = jax.random.split(key, 4)

    params = init_params(k_par, vocab_size=V, embedding_dim=E, hidden_units=H)
    x = jax.random.randint(k_x, (B, 1), 0, V, dtype=jnp.int32)
    dec_hs = jax.random.normal(k_h, (1, B, H), jnp.float32)
    enc_output = jax.random.normal(k_enc, (S, B, H), jnp.float32)

    ref_fc, ref_h, ref_attn = _reference(x, dec_hs, enc_output, params)

    # ---- exact f32 path: tight semantic check (tile_s=4 exercises the S streaming) ----
    prep32 = prepare_params(params, hidden_units=H, compute_dtype=jnp.float32)
    fc_out, dec_hs_new, attn_w = rnn_decoder_forward(x, dec_hs, enc_output, prep32, tile_s=4)
    jax.block_until_ready((fc_out, dec_hs_new, attn_w))
    assert fc_out.shape == (B, 1, V) and dec_hs_new.shape == (1, B, H) and attn_w.shape == (B, S, 1)
    assert jnp.allclose(fc_out, ref_fc, atol=2e-4, rtol=2e-4)
    assert jnp.allclose(dec_hs_new, ref_h, atol=2e-4, rtol=2e-4)
    assert jnp.allclose(attn_w, ref_attn, atol=2e-4, rtol=2e-4)

    # ---- bf16-weight fast path (MXU-native, f32 accumulation + f32 gate/softmax math) ----
    prep16 = prepare_params(params, hidden_units=H, compute_dtype=jnp.bfloat16)
    fc16, h16, attn16 = rnn_decoder_forward(x, dec_hs, enc_output, prep16, tile_s=4)
    jax.block_until_ready((fc16, h16, attn16))
    assert jnp.allclose(fc16, ref_fc, atol=5e-2, rtol=5e-2)
    assert jnp.allclose(h16, ref_h, atol=5e-2, rtol=5e-2)
    assert jnp.allclose(attn16, ref_attn, atol=5e-2, rtol=5e-2)

    print("KERNEL_OK")
</pallas_src>

<mosaic_0001>
module attributes {stable_mosaic.version = 11 : i64} {
  func.func @_attn_gru_kernel(%arg0: i32, %arg1: memref<2x32xf32, #tpu.memory_space<vmem>>, %arg2: memref<2x16xf32, #tpu.memory_space<vmem>>, %arg3: memref<4x2x32xf32, #tpu.memory_space<vmem>>, %arg4: memref<32x32xf32, #tpu.memory_space<vmem>>, %arg5: memref<1x32xf32, #tpu.memory_space<vmem>>, %arg6: memref<32x32xf32, #tpu.memory_space<vmem>>, %arg7: memref<1x32xf32, #tpu.memory_space<vmem>>, %arg8: memref<1x32xf32, #tpu.memory_space<vmem>>, %arg9: memref<1x1xf32, #tpu.memory_space<vmem>>, %arg10: memref<32x96xf32, #tpu.memory_space<vmem>>, %arg11: memref<16x96xf32, #tpu.memory_space<vmem>>, %arg12: memref<1x96xf32, #tpu.memory_space<vmem>>, %arg13: memref<32x96xf32, #tpu.memory_space<vmem>>, %arg14: memref<1x96xf32, #tpu.memory_space<vmem>>, %arg15: memref<2x32xf32, #tpu.memory_space<vmem>>, %arg16: memref<2x8xf32, #tpu.memory_space<vmem>>, %arg17: memref<2x32xf32, #tpu.memory_space<vmem>>, %arg18: memref<2x1xf32, #tpu.memory_space<vmem>>, %arg19: memref<2x1xf32, #tpu.memory_space<vmem>>, %arg20: memref<2x32xf32, #tpu.memory_space<vmem>>, %arg21: memref<8x2xf32, #tpu.memory_space<vmem>>) attributes {dimension_semantics = [#tpu.dimension_semantics<arbitrary>], iteration_bounds = array<i64: 2>, scalar_prefetch = 0 : i64, scratch_operands = 5 : i64, tpu.core_type = #tpu.core_type<tc>, window_params = [{pipeline_mode = #tpu.pipeline_mode<synchronous>, transform_indices = @transform_0, window_bounds = array<i64: 2, 32>}, {pipeline_mode = #tpu.pipeline_mode<synchronous>, transform_indices = @transform_1, window_bounds = array<i64: 2, 16>}, {transform_indices = @transform_2, window_bounds = array<i64: 4, 2, 32>}, {pipeline_mode = #tpu.pipeline_mode<synchronous>, transform_indices = @transform_3, window_bounds = array<i64: 32, 32>}, {pipeline_mode = #tpu.pipeline_mode<synchronous>, transform_indices = @transform_4, window_bounds = array<i64: 1, 32>}, {pipeline_mode = #tpu.pipeline_mode<synchronous>, transform_indices = @transform_5, window_bounds = array<i64: 32, 32>}, {pipeline_mode = #tpu.pipeline_mode<synchronous>, transform_indices = @transform_6, window_bounds = array<i64: 1, 32>}, {pipeline_mode = #tpu.pipeline_mode<synchronous>, transform_indices = @transform_7, window_bounds = array<i64: 1, 32>}, {pipeline_mode = #tpu.pipeline_mode<synchronous>, transform_indices = @transform_8, window_bounds = array<i64: 1, 1>}, {pipeline_mode = #tpu.pipeline_mode<synchronous>, transform_indices = @transform_9, window_bounds = array<i64: 32, 96>}, {pipeline_mode = #tpu.pipeline_mode<synchronous>, transform_indices = @transform_10, window_bounds = array<i64: 16, 96>}, {pipeline_mode = #tpu.pipeline_mode<synchronous>, transform_indices = @transform_11, window_bounds = array<i64: 1, 96>}, {pipeline_mode = #tpu.pipeline_mode<synchronous>, transform_indices = @transform_12, window_bounds = array<i64: 32, 96>}, {pipeline_mode = #tpu.pipeline_mode<synchronous>, transform_indices = @transform_13, window_bounds = array<i64: 1, 96>}, {pipeline_mode = #tpu.pipeline_mode<synchronous>, transform_indices = @transform_14, window_bounds = array<i64: 2, 32>}, {pipeline_mode = #tpu.pipeline_mode<synchronous>, transform_indices = @transform_15, window_bounds = array<i64: 2, 8>}]} {
    %c0_i32 = arith.constant 0 : i32
    %0 = arith.cmpi eq, %arg0, %c0_i32 : i32
    %1 = arith.extui %0 : i1 to i32
    %c0_i32_0 = arith.constant 0 : i32
    %2 = arith.cmpi ne, %1, %c0_i32_0 : i32
    scf.if %2 {
      %cst_31 = arith.constant 0xFF800000 : f32
      %58 = vector.broadcast %cst_31 : f32 to vector<2x1xf32>
      %c0_32 = arith.constant 0 : index
      %c0_33 = arith.constant 0 : index
      %59 = vector.load %arg18[%c0_32, %c0_33] : memref<2x1xf32, #tpu.memory_space<vmem>>, vector<2x1xf32>
      tpu.vector_store %arg18[%c0_32, %c0_33], %58 {strides = array<i32>} : memref<2x1xf32, #tpu.memory_space<vmem>>, vector<2x1xf32>,
      %cst_34 = arith.constant 0.000000e+00 : f32
      %60 = vector.broadcast %cst_34 : f32 to vector<2x1xf32>
      %c0_35 = arith.constant 0 : index
      %c0_36 = arith.constant 0 : index
      %61 = vector.load %arg19[%c0_35, %c0_36] : memref<2x1xf32, #tpu.memory_space<vmem>>, vector<2x1xf32>
      tpu.vector_store %arg19[%c0_35, %c0_36], %60 {strides = array<i32>} : memref<2x1xf32, #tpu.memory_space<vmem>>, vector<2x1xf32>,
      %cst_37 = arith.constant 0.000000e+00 : f32
      %62 = vector.broadcast %cst_37 : f32 to vector<2x32xf32>
      %c0_38 = arith.constant 0 : index
      %c0_39 = arith.constant 0 : index
      %63 = vector.load %arg20[%c0_38, %c0_39] : memref<2x32xf32, #tpu.memory_space<vmem>>, vector<2x32xf32>
      tpu.vector_store %arg20[%c0_38, %c0_39], %62 {strides = array<i32>} : memref<2x32xf32, #tpu.memory_space<vmem>>, vector<2x32xf32>,
      %c0_40 = arith.constant 0 : index
      %c0_41 = arith.constant 0 : index
      %64 = vector.load %arg1[%c0_40, %c0_41] : memref<2x32xf32, #tpu.memory_space<vmem>>, vector<2x32xf32>
      %c0_42 = arith.constant 0 : index
      %c0_43 = arith.constant 0 : index
      %65 = vector.load %arg4[%c0_42, %c0_43] : memref<32x32xf32, #tpu.memory_space<vmem>>, vector<32x32xf32>
      %cst_44 = arith.constant dense<0.000000e+00> : vector<2x32xf32>
      %66 = tpu.matmul %64, %65, %cst_44 {dimension_numbers = #tpu.dot_dimension_numbers<[1], [0], [0], [1], [0, 0, 1, 1], [], []>} : vector<2x32xf32>, vector<32x32xf32>, vector<2x32xf32> -> vector<2x32xf32>
      %c0_45 = arith.constant 0 : index
      %c0_46 = arith.constant 0 : index
      %67 = vector.load %arg5[%c0_45, %c0_46] : memref<1x32xf32, #tpu.memory_space<vmem>>, vector<1x32xf32>
      %68 = vector.broadcast %67 : vector<1x32xf32> to vector<2x32xf32>
      %69 = arith.addf %66, %68 : vector<2x32xf32>
      %c0_47 = arith.constant 0 : index
      %c0_48 = arith.constant 0 : index
      %70 = vector.load %arg17[%c0_47, %c0_48] : memref<2x32xf32, #tpu.memory_space<vmem>>, vector<2x32xf32>
      tpu.vector_store %arg17[%c0_47, %c0_48], %69 {strides = array<i32>} : memref<2x32xf32, #tpu.memory_space<vmem>>, vector<2x32xf32>,
    } else {
    }
    %c0 = arith.constant 0 : index
    %c0_1 = arith.constant 0 : index
    %c0_2 = arith.constant 0 : index
    %3 = vector.load %arg3[%c0, %c0_1, %c0_2] : memref<4x2x32xf32, #tpu.memory_space<vmem>>, vector<4x2x32xf32>
    %4 = vector.shape_cast %3 : vector<4x2x32xf32> to vector<8x32xf32>
    %c0_3 = arith.constant 0 : index
    %c0_4 = arith.constant 0 : index
    %5 = vector.load %arg6[%c0_3, %c0_4] : memref<32x32xf32, #tpu.memory_space<vmem>>, vector<32x32xf32>
    %cst = arith.constant dense<0.000000e+00> : vector<8x32xf32>
    %6 = tpu.matmul %4, %5, %cst {dimension_numbers = #tpu.dot_dimension_numbers<[1], [0], [0], [1], [0, 0, 1, 1], [], []>} : vector<8x32xf32>, vector<32x32xf32>, vector<8x32xf32> -> vector<8x32xf32>
    %c0_5 = arith.constant 0 : index
    %c0_6 = arith.constant 0 : index
    %7 = vector.load %arg7[%c0_5, %c0_6] : memref<1x32xf32, #tpu.memory_space<vmem>>, vector<1x32xf32>
    %8 = vector.broadcast %7 : vector<1x32xf32> to vector<8x32xf32>
    %9 = arith.addf %6, %8 : vector<8x32xf32>
    %c0_7 = arith.constant 0 : index
    %c0_8 = arith.constant 0 : index
    %10 = vector.load %arg17[%c0_7, %c0_8] : memref<2x32xf32, #tpu.memory_space<vmem>>, vector<2x32xf32>
    %11 = vector.shape_cast %10 : vector<2x32xf32> to vector<1x2x32xf32>
    %12 = vector.shape_cast %9 : vector<8x32xf32> to vector<4x2x32xf32>
    %13 = vector.broadcast %11 : vector<1x2x32xf32> to vector<4x2x32xf32>
    %14 = arith.addf %13, %12 : vector<4x2x32xf32>
    %15 = math.tanh %14 : vector<4x2x32xf32>
    %c0_9 = arith.constant 0 : index
    %c0_10 = arith.constant 0 : index
    %16 = vector.load %arg8[%c0_9, %c0_10] : memref<1x32xf32, #tpu.memory_space<vmem>>, vector<1x32xf32>
    %17 = vector.shape_cast %16 : vector<1x32xf32> to vector<1x1x32xf32>
    %18 = vector.broadcast %17 : vector<1x1x32xf32> to vector<4x2x32xf32>
    %19 = arith.mulf %15, %18 : vector<4x2x32xf32>
    %cst_11 = arith.constant dense<0.000000e+00> : vector<4x2xf32>
    %20 = vector.multi_reduction <add>, %19, %cst_11 [2] : vector<4x2x32xf32> to vector<4x2xf32>
    %c0_12 = arith.constant 0 : index
    %c0_13 = arith.constant 0 : index
    %21 = vector.load %arg9[%c0_12, %c0_13] : memref<1x1xf32, #tpu.memory_space<vmem>>, vector<1x1xf32>
    %22 = vector.broadcast %21 : vector<1x1xf32> to vector<4x2xf32>
    %23 = arith.addf %20, %22 : vector<4x2xf32>
    %c4_i32 = arith.constant 4 : i32
    %24 = arith.muli %arg0, %c4_i32 : i32
    %25 = tpu.assume_multiple %24, 4 : i32
    %26 = arith.index_cast %25 : i32 to index
    %c0_14 = arith.constant 0 : index
    %27 = vector.load %arg21[%26, %c0_14] : memref<8x2xf32, #tpu.memory_space<vmem>>, vector<4x2xf32>
    tpu.vector_store %arg21[%26, %c0_14], %23 {strides = array<i32>} : memref<8x2xf32, #tpu.memory_space<vmem>>, vector<4x2xf32>,
    %28 = tpu.transpose %23, [1, 0] : vector<4x2xf32> -> vector<2x4xf32>
    %c0_15 = arith.constant 0 : index
    %c0_16 = arith.constant 0 : index
    %29 = vector.load %arg18[%c0_15, %c0_16] : memref<2x1xf32, #tpu.memory_space<vmem>>, vector<2x1xf32>
    %cst_17 = arith.constant dense<0xFF800000> : vector<2xf32>
    %30 = vector.multi_reduction <maximumf>, %28, %cst_17 [1] : vector<2x4xf32> to vector<2xf32>
    %31 = vector.shape_cast %30 : vector<2xf32> to vector<2x1xf32>
    %32 = arith.maximumf %29, %31 : vector<2x1xf32>
    %33 = arith.subf %29, %32 : vector<2x1xf32>
    %34 = math.exp %33 : vector<2x1xf32>
    %35 = vector.broadcast %32 : vector<2x1xf32> to vector<2x4xf32>
    %36 = arith.subf %28, %35 : vector<2x4xf32>
    %37 = math.exp %36 : vector<2x4xf32>
    %c0_18 = arith.constant 0 : index
    %c0_19 = arith.constant 0 : index
    %38 = vector.load %arg19[%c0_18, %c0_19] : memref<2x1xf32, #tpu.memory_space<vmem>>, vector<2x1xf32>
    %39 = arith.mulf %34, %38 : vector<2x1xf32>
    %cst_20 = arith.constant dense<0.000000e+00> : vector<2xf32>
    %40 = vector.multi_reduction <add>, %37, %cst_20 [1] : vector<2x4xf32> to vector<2xf32>
    %41 = vector.shape_cast %40 : vector<2xf32> to vector<2x1xf32>
    %42 = arith.addf %39, %41 : vector<2x1xf32>
    %c0_21 = arith.constant 0 : index
    %c0_22 = arith.constant 0 : index
    %43 = vector.load %arg19[%c0_21, %c0_22] : memref<2x1xf32, #tpu.memory_space<vmem>>, vector<2x1xf32>
    tpu.vector_store %arg19[%c0_21, %c0_22], %42 {strides = array<i32>} : memref<2x1xf32, #tpu.memory_space<vmem>>, vector<2x1xf32>,
    %c0_23 = arith.constant 0 : index
    %c0_24 = arith.constant 0 : index
    %44 = vector.load %arg20[%c0_23, %c0_24] : memref<2x32xf32, #tpu.memory_space<vmem>>, vector<2x32xf32>
    %45 = vector.broadcast %34 : vector<2x1xf32> to vector<2x32xf32>
    %46 = arith.mulf %45, %44 : vector<2x32xf32>
    %47 = tpu.transpose %37, [1, 0] : vector<2x4xf32> -> vector<4x2xf32>
    %48 = vector.shape_cast %47 : vector<4x2xf32> to vector<4x2x1xf32>
    %49 = vector.broadcast %48 : vector<4x2x1xf32> to vector<4x2x32xf32>
    %50 = arith.mulf %49, %3 : vector<4x2x32xf32>
    %cst_25 = arith.constant dense<0.000000e+00> : vector<2x32xf32>
    %51 = vector.multi_reduction <add>, %50, %cst_25 [0] : vector<4x2x32xf32> to vector<2x32xf32>
    %52 = arith.addf %46, %51 : vector<2x32xf32>
    %c0_26 = arith.constant 0 : index
    %c0_27 = arith.constant 0 : index
    %53 = vector.load %arg20[%c0_26, %c0_27] : memref<2x32xf32, #tpu.memory_space<vmem>>, vector<2x32xf32>
    tpu.vector_store %arg20[%c0_26, %c0_27], %52 {strides = array<i32>} : memref<2x32xf32, #tpu.memory_space<vmem>>, vector<2x32xf32>,
    %c0_28 = arith.constant 0 : index
    %c0_29 = arith.constant 0 : index
    %54 = vector.load %arg18[%c0_28, %c0_29] : memref<2x1xf32, #tpu.memory_space<vmem>>, vector<2x1xf32>
    tpu.vector_store %arg18[%c0_28, %c0_29], %32 {strides = array<i32>} : memref<2x1xf32, #tpu.memory_space<vmem>>, vector<2x1xf32>,
    %c1_i32 = arith.constant 1 : i32
    %55 = arith.cmpi eq, %arg0, %c1_i32 : i32
    %56 = arith.extui %55 : i1 to i32
    %c0_i32_30 = arith.constant 0 : i32
    %57 = arith.cmpi ne, %56, %c0_i32_30 : i32
    scf.if %57 {
      %c0_31 = arith.constant 0 : index
      %c0_32 = arith.constant 0 : index
      %58 = vector.load %arg19[%c0_31, %c0_32] : memref<2x1xf32, #tpu.memory_space<vmem>>, vector<2x1xf32>
      %59 = tpu.reciprocal %58 : vector<2x1xf32> -> vector<2x1xf32>
      %c0_33 = arith.constant 0 : index
      %c0_34 = arith.constant 0 : index
      %60 = vector.load %arg21[%c0_33, %c0_34] : memref<8x2xf32, #tpu.memory_space<vmem>>, vector<8x2xf32>
      %61 = tpu.transpose %60, [1, 0] : vector<8x2xf32> -> vector<2x8xf32>
      %c0_35 = arith.constant 0 : index
      %c0_36 = arith.constant 0 : index
      %62 = vector.load %arg18[%c0_35, %c0_36] : memref<2x1xf32, #tpu.memory_space<vmem>>, vector<2x1xf32>
      %63 = vector.broadcast %62 : vector<2x1xf32> to vector<2x8xf32>
      %64 = arith.subf %61, %63 : vector<2x8xf32>
      %65 = math.exp %64 : vector<2x8xf32>
      %66 = vector.broadcast %59 : vector<2x1xf32> to vector<2x8xf32>
      %67 = arith.mulf %65, %66 : vector<2x8xf32>
      %c0_37 = arith.constant 0 : index
      %c0_38 = arith.constant 0 : index
      %68 = vector.load %arg16[%c0_37, %c0_38] : memref<2x8xf32, #tpu.memory_space<vmem>>, vector<2x8xf32>
      tpu.vector_store %arg16[%c0_37, %c0_38], %67 {strides = array<i32>} : memref<2x8xf32, #tpu.memory_space<vmem>>, vector<2x8xf32>,
      %c0_39 = arith.constant 0 : index
      %c0_40 = arith.constant 0 : index
      %69 = vector.load %arg20[%c0_39, %c0_40] : memref<2x32xf32, #tpu.memory_space<vmem>>, vector<2x32xf32>
      %70 = vector.broadcast %59 : vector<2x1xf32> to vector<2x32xf32>
      %71 = arith.mulf %69, %70 : vector<2x32xf32>
      %c0_41 = arith.constant 0 : index
      %c0_42 = arith.constant 0 : index
      %72 = vector.load %arg1[%c0_41, %c0_42] : memref<2x32xf32, #tpu.memory_space<vmem>>, vector<2x32xf32>
      %c0_43 = arith.constant 0 : index
      %c0_44 = arith.constant 0 : index
      %73 = vector.load %arg10[%c0_43, %c0_44] : memref<32x96xf32, #tpu.memory_space<vmem>>, vector<32x96xf32>
      %cst_45 = arith.constant dense<0.000000e+00> : vector<2x96xf32>
      %74 = tpu.matmul %71, %73, %cst_45 {dimension_numbers = #tpu.dot_dimension_numbers<[1], [0], [0], [1], [0, 0, 1, 1], [], []>} : vector<2x32xf32>, vector<32x96xf32>, vector<2x96xf32> -> vector<2x96xf32>
      %c0_46 = arith.constant 0 : index
      %c0_47 = arith.constant 0 : index
      %75 = vector.load %arg2[%c0_46, %c0_47] : memref<2x16xf32, #tpu.memory_space<vmem>>, vector<2x16xf32>
      %c0_48 = arith.constant 0 : index
      %c0_49 = arith.constant 0 : index
      %76 = vector.load %arg11[%c0_48, %c0_49] : memref<16x96xf32, #tpu.memory_space<vmem>>, vector<16x96xf32>
      %cst_50 = arith.constant dense<0.000000e+00> : vector<2x96xf32>
      %77 = tpu.matmul %75, %76, %cst_50 {dimension_numbers = #tpu.dot_dimension_numbers<[1], [0], [0], [1], [0, 0, 1, 1], [], []>} : vector<2x16xf32>, vector<16x96xf32>, vector<2x96xf32> -> vector<2x96xf32>
      %78 = arith.addf %74, %77 : vector<2x96xf32>
      %c0_51 = arith.constant 0 : index
      %c0_52 = arith.constant 0 : index
      %79 = vector.load %arg12[%c0_51, %c0_52] : memref<1x96xf32, #tpu.memory_space<vmem>>, vector<1x96xf32>
      %80 = vector.broadcast %79 : vector<1x96xf32> to vector<2x96xf32>
      %81 = arith.addf %78, %80 : vector<2x96xf32>
      %c0_53 = arith.constant 0 : index
      %c0_54 = arith.constant 0 : index
      %82 = vector.load %arg13[%c0_53, %c0_54] : memref<32x96xf32, #tpu.memory_space<vmem>>, vector<32x96xf32>
      %cst_55 = arith.constant dense<0.000000e+00> : vector<2x96xf32>
      %83 = tpu.matmul %72, %82, %cst_55 {dimension_numbers = #tpu.dot_dimension_numbers<[1], [0], [0], [1], [0, 0, 1, 1], [], []>} : vector<2x32xf32>, vector<32x96xf32>, vector<2x96xf32> -> vector<2x96xf32>
      %c0_56 = arith.constant 0 : index
      %c0_57 = arith.constant 0 : index
      %84 = vector.load %arg14[%c0_56, %c0_57] : memref<1x96xf32, #tpu.memory_space<vmem>>, vector<1x96xf32>
      %85 = vector.broadcast %84 : vector<1x96xf32> to vector<2x96xf32>
      %86 = arith.addf %83, %85 : vector<2x96xf32>
      %87 = vector.extract_strided_slice %81 {offsets = [0, 0], sizes = [2, 32], strides = [1, 1]} : vector<2x96xf32> to vector<2x32xf32>
      %88 = vector.extract_strided_slice %86 {offsets = [0, 0], sizes = [2, 32], strides = [1, 1]} : vector<2x96xf32> to vector<2x32xf32>
      %89 = arith.addf %87, %88 : vector<2x32xf32>
      %90 = arith.negf %89 : vector<2x32xf32>
      %91 = math.exp %90 : vector<2x32xf32>
      %cst_58 = arith.constant 1.000000e+00 : f32
      %92 = vector.broadcast %cst_58 : f32 to vector<2x32xf32>
      %93 = arith.addf %92, %91 : vector<2x32xf32>
      %94 = arith.divf %92, %93 : vector<2x32xf32>
      %95 = vector.extract_strided_slice %81 {offsets = [0, 32], sizes = [2, 32], strides = [1, 1]} : vector<2x96xf32> to vector<2x32xf32>
      %96 = vector.extract_strided_slice %86 {offsets = [0, 32], sizes = [2, 32], strides = [1, 1]} : vector<2x96xf32> to vector<2x32xf32>
      %97 = arith.addf %95, %96 : vector<2x32xf32>
      %98 = arith.negf %97 : vector<2x32xf32>
      %99 = math.exp %98 : vector<2x32xf32>
      %cst_59 = arith.constant 1.000000e+00 : f32
      %100 = vector.broadcast %cst_59 : f32 to vector<2x32xf32>
      %101 = arith.addf %100, %99 : vector<2x32xf32>
      %102 = arith.divf %100, %101 : vector<2x32xf32>
      %103 = vector.extract_strided_slice %81 {offsets = [0, 64], sizes = [2, 32], strides = [1, 1]} : vector<2x96xf32> to vector<2x32xf32>
      %104 = vector.extract_strided_slice %86 {offsets = [0, 64], sizes = [2, 32], strides = [1, 1]} : vector<2x96xf32> to vector<2x32xf32>
      %105 = arith.mulf %94, %104 : vector<2x32xf32>
      %106 = arith.addf %103, %105 : vector<2x32xf32>
      %107 = math.tanh %106 : vector<2x32xf32>
      %cst_60 = arith.constant 1.000000e+00 : f32
      %108 = vector.broadcast %cst_60 : f32 to vector<2x32xf32>
      %109 = arith.subf %108, %102 : vector<2x32xf32>
      %110 = arith.mulf %109, %107 : vector<2x32xf32>
      %111 = arith.mulf %102, %72 : vector<2x32xf32>
      %112 = arith.addf %110, %111 : vector<2x32xf32>
      %c0_61 = arith.constant 0 : index
      %c0_62 = arith.constant 0 : index
      %113 = vector.load %arg15[%c0_61, %c0_62] : memref<2x32xf32, #tpu.memory_space<vmem>>, vector<2x32xf32>
      tpu.vector_store %arg15[%c0_61, %c0_62], %112 {strides = array<i32>} : memref<2x32xf32, #tpu.memory_space<vmem>>, vector<2x32xf32>,
    } else {
    }
    return
  }
  func.func @transform_0(%arg0: i32) -> (i32, i32) {
    %c0_i32 = arith.constant 0 : i32
    %c0_i32_0 = arith.constant 0 : i32
    %c0_i32_1 = arith.constant 0 : i32
    return %c0_i32, %c0_i32_0 : i32, i32
  }
  func.func @transform_1(%arg0: i32) -> (i32, i32) {
    %c0_i32 = arith.constant 0 : i32
    %c0_i32_0 = arith.constant 0 : i32
    %c0_i32_1 = arith.constant 0 : i32
    return %c0_i32, %c0_i32_0 : i32, i32
  }
  func.func @transform_2(%arg0: i32) -> (i32, i32, i32) {
    %c0_i32 = arith.constant 0 : i32
    %c0_i32_0 = arith.constant 0 : i32
    %c0_i32_1 = arith.constant 0 : i32
    return %arg0, %c0_i32, %c0_i32_0 : i32, i32, i32
  }
  func.func @transform_3(%arg0: i32) -> (i32, i32) {
    %c0_i32 = arith.constant 0 : i32
    %c0_i32_0 = arith.constant 0 : i32
    %c0_i32_1 = arith.constant 0 : i32
    return %c0_i32, %c0_i32_0 : i32, i32
  }
  func.func @transform_4(%arg0: i32) -> (i32, i32) {
    %c0_i32 = arith.constant 0 : i32
    %c0_i32_0 = arith.constant 0 : i32
    %c0_i32_1 = arith.constant 0 : i32
    return %c0_i32, %c0_i32_0 : i32, i32
  }
  func.func @transform_5(%arg0: i32) -> (i32, i32) {
    %c0_i32 = arith.constant 0 : i32
    %c0_i32_0 = arith.constant 0 : i32
    %c0_i32_1 = arith.constant 0 : i32
    return %c0_i32, %c0_i32_0 : i32, i32
  }
  func.func @transform_6(%arg0: i32) -> (i32, i32) {
    %c0_i32 = arith.constant 0 : i32
    %c0_i32_0 = arith.constant 0 : i32
    %c0_i32_1 = arith.constant 0 : i32
    return %c0_i32, %c0_i32_0 : i32, i32
  }
  func.func @transform_7(%arg0: i32) -> (i32, i32) {
    %c0_i32 = arith.constant 0 : i32
    %c0_i32_0 = arith.constant 0 : i32
    %c0_i32_1 = arith.constant 0 : i32
    return %c0_i32, %c0_i32_0 : i32, i32
  }
  func.func @transform_8(%arg0: i32) -> (i32, i32) {
    %c0_i32 = arith.constant 0 : i32
    %c0_i32_0 = arith.constant 0 : i32
    %c0_i32_1 = arith.constant 0 : i32
    return %c0_i32, %c0_i32_0 : i32, i32
  }
  func.func @transform_9(%arg0: i32) -> (i32, i32) {
    %c0_i32 = arith.constant 0 : i32
    %c0_i32_0 = arith.constant 0 : i32
    %c0_i32_1 = arith.constant 0 : i32
    return %c0_i32, %c0_i32_0 : i32, i32
  }
  func.func @transform_10(%arg0: i32) -> (i32, i32) {
    %c0_i32 = arith.constant 0 : i32
    %c0_i32_0 = arith.constant 0 : i32
    %c0_i32_1 = arith.constant 0 : i32
    return %c0_i32, %c0_i32_0 : i32, i32
  }
  func.func @transform_11(%arg0: i32) -> (i32, i32) {
    %c0_i32 = arith.constant 0 : i32
    %c0_i32_0 = arith.constant 0 : i32
    %c0_i32_1 = arith.constant 0 : i32
    return %c0_i32, %c0_i32_0 : i32, i32
  }
  func.func @transform_12(%arg0: i32) -> (i32, i32) {
    %c0_i32 = arith.constant 0 : i32
    %c0_i32_0 = arith.constant 0 : i32
    %c0_i32_1 = arith.constant 0 : i32
    return %c0_i32, %c0_i32_0 : i32, i32
  }
  func.func @transform_13(%arg0: i32) -> (i32, i32) {
    %c0_i32 = arith.constant 0 : i32
    %c0_i32_0 = arith.constant 0 : i32
    %c0_i32_1 = arith.constant 0 : i32
    return %c0_i32, %c0_i32_0 : i32, i32
  }
  func.func @transform_14(%arg0: i32) -> (i32, i32) {
    %c0_i32 = arith.constant 0 : i32
    %c0_i32_0 = arith.constant 0 : i32
    %c0_i32_1 = arith.constant 0 : i32
    return %c0_i32, %c0_i32_0 : i32, i32
  }
  func.func @transform_15(%arg0: i32) -> (i32, i32) {
    %c0_i32 = arith.constant 0 : i32
    %c0_i32_0 = arith.constant 0 : i32
    %c0_i32_1 = arith.constant 0 : i32
    return %c0_i32, %c0_i32_0 : i32, i32
  }
}

</mosaic_0001>

<bundles_post_ra>
// kernel: tpu_custom_call.1
= control target key start
LH: loop header
LB: loop body
LE: loop exit
PB: predicated region body
PF: predicated region fallthrough
CT: control target
= control target key end

     0   :  { %s2820_s0 = inlined_call_operand.vmem [shape: f32[2,32], index: 0, kind: input, shape index: {}]   ;;  %s2821_s1 = inlined_call_operand.hbm [shape: f32[2,16], index: 1, kind: input, shape index: {}]   ;;  %s2822_s2 = inlined_call_operand.hbm [shape: f32[8,2,32], index: 2, kind: input, shape index: {}]   ;;  %s2823_s3 = inlined_call_operand.hbm [shape: f32[32,32], index: 3, kind: input, shape index: {}]   ;;  %s2824_s4 = inlined_call_operand.hbm [shape: f32[1,32], index: 4, kind: input, shape index: {}]   ;;  %s2825_s5 = inlined_call_operand.hbm [shape: f32[32,32], index: 5, kind: input, shape index: {}]   ;;  %s2826_s6 = inlined_call_operand.hbm [shape: f32[1,32], index: 6, kind: input, shape index: {}]   ;;  %s2827_s7 = inlined_call_operand.hbm [shape: f32[1,32], index: 7, kind: input, shape index: {}]   ;;  %s2828_s8 = inlined_call_operand.<no memory space> [shape: f32[1,1], index: 8, kind: input, shape index: {}]   ;;  %s2829_s9 = inlined_call_operand.vmem [shape: f32[32,96], index: 9, kind: input, shape index: {}]   ;;  %s2830_s10 = inlined_call_operand.hbm [shape: f32[16,96], index: 10, kind: input, shape index: {}]   ;;  %s2831_s11 = inlined_call_operand.vmem [shape: f32[1,96], index: 11, kind: input, shape index: {}]   ;;  %s2832_s12 = inlined_call_operand.hbm [shape: f32[32,96], index: 12, kind: input, shape index: {}]   ;;  %s2833_s13 = inlined_call_operand.vmem [shape: f32[1,96], index: 13, kind: input, shape index: {}]   ;;  %s2834_s14 = inlined_call_operand.hbm [shape: f32[2,32], index: 14, kind: output, shape index: {0}]   ;;  %s2835_s15 = inlined_call_operand.hbm [shape: f32[2,8], index: 15, kind: output, shape index: {1}]  }
   0x1   :  { %2845 = sst [smem:[#allocation34_spill]] %s2820_s0  ;;  %v21_v0 = vstv %s2828_s8 }
   0x2   :  { %2846 = sst [smem:[#allocation35_spill]] %s2829_s9  ;;  %22 = vst [vmem:[#allocation7] sm:$0x1] %v21_v0 }
   0x3   :  { %2847 = sst [smem:[#allocation36_spill]] %s2831_s11 }
   0x4   :  { %2848 = sst [smem:[#allocation37_spill]] %s2833_s13 }
   0x5   :  { %2849 = sst [smem:[#allocation38_spill]] %s2834_s14 }
   0x6   :  { %2850 = sst [smem:[#allocation39_spill]] %s2835_s15 }
   0x7   :  { %23 = vsyncpa [#allocation9], 0 }
   0x8   :  { %24 = vsyncpa [#allocation12], 0 }
   0x9   :  { %26 = vsyncpa [#allocation12 + $0x1], 0 }
   0xa   :  { %27 = vsyncpa [#allocation15], 0 }
   0xb   :  { %28 = vsyncpa [#allocation18], 0 }
   0xc   :  { %29 = vsyncpa [#allocation21], 0 }
   0xd   :  { %30 = vsyncpa [#allocation10], 0 }
   0xe   :  { %31 = vsyncpa [#allocation25], 0  ;;  %s2365_s20 = smov 0   ;;  %s2367_s21 = smov 0  }
   0xf   :  { %s2369_s22 = smov 0   ;;  %s2371_s23 = smov 0  }
  0x10 LB: > { %s2251_s8 = smov [#allocation13]   ;;  %s2386_s25 = sadd.s32 4294967295, %s2249_s23   ;;  %s2249_s23 = sphi %s2371_s23, %s2881_s23   ;;  %s2245_s22 = sphi %s2369_s22, %s2880_s22   ;;  %s2241_s21 = sphi %s2367_s21, %s2879_s21   ;;  %s2237_s20 = sphi %s2365_s20, %s2878_s20  }
  0x11   : > { %s409_s24 = sshll.u32 %s2251_s8, 4  ;;  %p1555_p0 = scmp.ge.s32.totalorder %s2249_s23, 1  ;;  %s2392_s24 = int_to_ptr.vmem [resolvable:$true] %s409_s24 }
  0x12   : > { %p2841_p1 = scmp.eq.s32.totalorder %s2386_s25, 0  ;;  %p383_p2 = scmp.lt.s32.totalorder %s2249_s23, 3 }
  0x13   : > { %s2252_s27 = smov [#allocation14]   ;;  %s2253_s30 = smov [#allocation17]  }
  0x14   : > { %p2394_p4 = pnand %p1555_p0, %p383_p2  ;;  %s423_s28 = sshll.u32 %s2252_s27, 4  ;;  %s2406_s28 = int_to_ptr.vmem [resolvable:$true] %s423_s28 }
  0x15   : > { %s447_s16 = sshll.u32 %s2253_s30, 4  ;;  %s1881_s19 = scalar_lea.hbm %s2823_s3, 512  ;;  %s2408_s16 = int_to_ptr.vmem [resolvable:$true] %s447_s16 }
  0x16   : > { %s2851_s26 = scalar_select %p2394_p4, 1, 0 }
  0x17   : > { %p1743_p5 = pneg %p2394_p4  ;;  %p1882_p7 = scmp.ne.s32.totalorder %s2823_s3, %s1881_s19 }
  0x18   : > { %p1888_p11 = scmp.lt.u32.totalorder %s1881_s19, %s2823_s3 }
  0x19   : > { %p2402_p6 = pnand %p1743_p5, %p2841_p1 }
  0x1b   : > { %p2418_p8 = pneg %p2402_p6 }
  0x1d   : > { %p1884_p9 = pnand %p2418_p8, %p1882_p7 }
  0x1f   : > { %p1885_p10 = pneg %p1884_p9 }
  0x21   : > { %p1890_p12 = pnand %p1888_p11, %p1885_p10 }
  0x23   : > { %1893 = shalt.err (!%p1890_p12)
}
  0x24   : > { %s1894_s15 = scalar_lea.vmem %s2392_s24, 512  ;;  %p1902_p5 = scmp.lt.s32.totalorder %s2392_s24, %s2392_s24 }
  0x25   : > { %p1895_p13 = scmp.ne.s32.totalorder %s2392_s24, %s1894_s15  ;;  %p1903_p3 = scmp.lt.s32.totalorder %s1894_s15, %s1894_s15 }
  0x27   : > { %p1897_p0 = pnand %p1895_p13, %p2418_p8  ;;  %p1904_p7 = por %p1903_p3, %p1902_p5 }
  0x29   : > { %p1898_p2 = pneg %p1897_p0 }
  0x2b   : > { %p1905_p9 = pnand %p1904_p7, %p1898_p2 }
  0x2d   : > { %1908 = shalt.err (!%p1905_p9)
}
  0x2e   : > { %s2839_s17 = smov 128   ;;  %s2843_s14 = smov 8  }
  0x2f   : > { %1749 = dma.hbm_to_vmem [thread:$0]  (!%p2402_p6), %s2823_s3, 512, %s2392_s24, [#allocation12], %s2839_s17, %s2839_s17, %s2843_s14  }
  0x30   : > { %s1909_s15 = scalar_lea.hbm %s2824_s4, 16 }
  0x31   : > { %p1910_p3 = scmp.ne.s32.totalorder %s2824_s4, %s1909_s15  ;;  %p1916_p12 = scmp.lt.u32.totalorder %s1909_s15, %s2824_s4 }
  0x33   : > { %p1912_p10 = pnand %p1910_p3, %p2418_p8 }
  0x35   : > { %p1913_p11 = pneg %p1912_p10 }
  0x37   : > { %p1918_p13 = pnand %p1916_p12, %p1913_p11 }
  0x39   : > { %1921 = shalt.err (!%p1918_p13)
}
  0x3a   : > { %s1922_s24 = scalar_lea.vmem %s2406_s28, 16  ;;  %s1929_s11 = scalar_lea.vmem %s2406_s28, 32 }
  0x3b   : > { %p1923_p0 = scmp.ne.s32.totalorder %s2406_s28, %s1922_s24  ;;  %p1930_p7 = scmp.lt.s32.totalorder %s2406_s28, %s2406_s28 }
  0x3c   : > { %p1931_p9 = scmp.lt.s32.totalorder %s1929_s11, %s1922_s24 }
  0x3d   : > { %p1925_p2 = pnand %p1923_p0, %p2418_p8 }
  0x3e   : > { %p1932_p3 = por %p1931_p9, %p1930_p7 }
  0x3f   : > { %p1926_p5 = pneg %p1925_p2 }
  0x41   : > { %p1933_p10 = pnand %p1932_p3, %p1926_p5 }
  0x43   : > { %1936 = shalt.err (!%p1933_p10)
}
  0x44   : > { %1752 = dma.hbm_to_vmem [thread:$0]  (!%p2402_p6), %s2824_s4, 16, %s2406_s28, [#allocation15]  }
  0x45   : > { %s1937_s19 = scalar_lea.hbm %s2826_s6, 16 }
  0x46   : > { %p1938_p11 = scmp.ne.s32.totalorder %s2826_s6, %s1937_s19  ;;  %p1944_p0 = scmp.lt.u32.totalorder %s1937_s19, %s2826_s6 }
  0x48   : > { %p1940_p12 = pnand %p1938_p11, %p2418_p8 }
  0x4a   : > { %p1941_p13 = pneg %p1940_p12 }
  0x4c   : > { %p1946_p2 = pnand %p1944_p0, %p1941_p13 }
  0x4e   : > { %1949 = shalt.err (!%p1946_p2)
}
  0x4f   : > { %s1950_s28 = scalar_lea.vmem %s2408_s16, 16  ;;  %s1957_s11 = scalar_lea.vmem %s2408_s16, 32 }
  0x50   : > { %p1951_p5 = scmp.ne.s32.totalorder %s2408_s16, %s1950_s28  ;;  %p1958_p3 = scmp.lt.s32.totalorder %s2408_s16, %s2408_s16 }
  0x51   : > { %p1959_p10 = scmp.lt.s32.totalorder %s1957_s11, %s1950_s28 }
  0x52   : > { %p1953_p7 = pnand %p1951_p5, %p2418_p8 }
  0x53   : > { %p1960_p11 = por %p1959_p10, %p1958_p3 }
  0x54   : > { %p1954_p9 = pneg %p1953_p7 }
  0x56   : > { %p1961_p12 = pnand %p1960_p11, %p1954_p9 }
  0x58   : > { %1964 = shalt.err (!%p1961_p12)
}
  0x59   : > { %1758 = dma.hbm_to_vmem [thread:$0]  (!%p2402_p6), %s2826_s6, 16, %s2408_s16, [#allocation18]  }
  0x5a   : > { %s2256_s13 = smov [#allocation20]   ;;  %s2257_s19 = smov [#allocation8]  }
  0x5b   : > { %s474_s18 = sshll.u32 %s2256_s13, 4  ;;  %s399_s8 = sshll.u32 %s2257_s19, 4  ;;  %s475_s18 = int_to_ptr.vmem [resolvable:$true] %s474_s18  ;;  %s400_s8 = int_to_ptr.vmem [resolvable:$true] %s399_s8 }
  0x5c   : > { %s1965_s24 = scalar_lea.hbm %s2830_s10, 256 }
  0x5d   : > { %p1966_p13 = scmp.ne.s32.totalorder %s2830_s10, %s1965_s24  ;;  %p1972_p5 = scmp.lt.u32.totalorder %s1965_s24, %s2830_s10 }
  0x5f   : > { %p1968_p0 = pnand %p1966_p13, %p2418_p8 }
  0x61   : > { %p1969_p2 = pneg %p1968_p0 }
  0x63   : > { %p1974_p7 = pnand %p1972_p5, %p1969_p2 }
  0x65   : > { %1977 = shalt.err (!%p1974_p7)
}
  0x66   : > { %s1978_s16 = scalar_lea.vmem %s475_s18, 256  ;;  %p1986_p11 = scmp.lt.s32.totalorder %s475_s18, %s475_s18 }
  0x67   : > { %p1979_p9 = scmp.ne.s32.totalorder %s475_s18, %s1978_s16  ;;  %p1987_p12 = scmp.lt.s32.totalorder %s1978_s16, %s1978_s16 }
  0x69   : > { %p1981_p3 = pnand %p1979_p9, %p2418_p8  ;;  %p1988_p1 = por %p1987_p12, %p1986_p11 }
  0x6b   : > { %p1982_p10 = pneg %p1981_p3 }
  0x6d   : > { %p1989_p4 = pnand %p1988_p1, %p1982_p10 }
  0x6f   : > { %1992 = shalt.err (!%p1989_p4)
}
  0x70   : > { %s2854_s9 = smov 128   ;;  %s1993_s15 = scalar_lea.hbm %s2821_s1, 32 }
  0x71   : > { %1764 = dma.hbm_to_vmem [thread:$0]  (!%p2402_p6), %s2830_s10, 256, %s475_s18, [#allocation21], %s2854_s9, %s2854_s9, %s2843_s14  }
  0x72   : > { %p1994_p1 = scmp.ne.s32.totalorder %s2821_s1, %s1993_s15  ;;  %p2000_p0 = scmp.lt.u32.totalorder %s1993_s15, %s2821_s1 }
  0x74   : > { %p1996_p4 = pnand %p1994_p1, %p2418_p8 }
  0x76   : > { %p1997_p13 = pneg %p1996_p4 }
  0x78   : > { %p2002_p2 = pnand %p2000_p0, %p1997_p13 }
  0x7a   : > { %2005 = shalt.err (!%p2002_p2)
}
  0x7b   : > { %s2006_s16 = scalar_lea.vmem %s400_s8, 32  ;;  %p2014_p3 = scmp.lt.s32.totalorder %s400_s8, %s400_s8 }
  0x7c   : > { %p2007_p5 = scmp.ne.s32.totalorder %s400_s8, %s2006_s16  ;;  %p2015_p10 = scmp.lt.s32.totalorder %s2006_s16, %s2006_s16 }
  0x7e   : > { %p2009_p7 = pnand %p2007_p5, %p2418_p8  ;;  %p2016_p11 = por %p2015_p10, %p2014_p3 }
  0x80   : > { %p2010_p9 = pneg %p2009_p7 }
  0x82   : > { %p2017_p12 = pnand %p2016_p11, %p2010_p9 }
  0x84   : > { %2020 = shalt.err (!%p2017_p12)
}
  0x85   : > { %1746 = dma.hbm_to_vmem [thread:$0]  (!%p2402_p6), %s2821_s1, 32, %s400_s8, [#allocation9]  }
  0x86   : > { %s2258_s13 = smov [#allocation16]   ;;  %s2259_s30 = smov [#allocation19]  }
  0x87   : > { %s433_s19 = sshll.u32 %s2258_s13, 4  ;;  %s458_s15 = sshll.u32 %s2259_s30, 4  ;;  %s434_s19 = int_to_ptr.vmem [resolvable:$true] %s433_s19  ;;  %s459_s15 = int_to_ptr.vmem [resolvable:$true] %s458_s15 }
  0x88   : > { %s2021_s11 = scalar_lea.hbm %s2825_s5, 512 }
  0x89   : > { %p2022_p1 = scmp.ne.s32.totalorder %s2825_s5, %s2021_s11  ;;  %p2028_p0 = scmp.lt.u32.totalorder %s2021_s11, %s2825_s5 }
  0x8b   : > { %p2024_p4 = pnand %p2022_p1, %p2418_p8 }
  0x8d   : > { %p2025_p13 = pneg %p2024_p4 }
  0x8f   : > { %p2030_p2 = pnand %p2028_p0, %p2025_p13 }
  0x91   : > { %2033 = shalt.err (!%p2030_p2)
}
  0x92   : > { %s2034_s8 = scalar_lea.vmem %s434_s19, 512  ;;  %p2042_p3 = scmp.lt.s32.totalorder %s434_s19, %s434_s19 }
  0x93   : > { %p2035_p5 = scmp.ne.s32.totalorder %s434_s19, %s2034_s8  ;;  %p2043_p10 = scmp.lt.s32.totalorder %s2034_s8, %s2034_s8 }
  0x95   : > { %p2037_p7 = pnand %p2035_p5, %p2418_p8  ;;  %p2044_p11 = por %p2043_p10, %p2042_p3 }
  0x97   : > { %p2038_p9 = pneg %p2037_p7 }
  0x99   : > { %p2045_p12 = pnand %p2044_p11, %p2038_p9 }
  0x9b   : > { %2048 = shalt.err (!%p2045_p12)
}
  0x9c   : > { %s2855_s17 = smov 8   ;;  %s2049_s28 = scalar_lea.hbm %s2827_s7, 16 }
  0x9d   : > { %1755 = dma.hbm_to_vmem [thread:$0]  (!%p2402_p6), %s2825_s5, 512, %s434_s19, [#allocation15], %s2854_s9, %s2854_s9, %s2855_s17  }
  0x9e   : > { %p2050_p1 = scmp.ne.s32.totalorder %s2827_s7, %s2049_s28  ;;  %p2056_p0 = scmp.lt.u32.totalorder %s2049_s28, %s2827_s7 }
  0xa0   : > { %p2052_p4 = pnand %p2050_p1, %p2418_p8 }
  0xa2   : > { %p2053_p13 = pneg %p2052_p4 }
  0xa4   : > { %p2058_p2 = pnand %p2056_p0, %p2053_p13 }
  0xa6   : > { %2061 = shalt.err (!%p2058_p2)
}
  0xa7   : > { %s2062_s8 = scalar_lea.vmem %s459_s15, 16  ;;  %s2069_s19 = scalar_lea.vmem %s459_s15, 32 }
  0xa8   : > { %p2063_p5 = scmp.ne.s32.totalorder %s459_s15, %s2062_s8  ;;  %p2070_p3 = scmp.lt.s32.totalorder %s459_s15, %s459_s15 }
  0xa9   : > { %p2071_p10 = scmp.lt.s32.totalorder %s2069_s19, %s2062_s8 }
  0xaa   : > { %p2065_p7 = pnand %p2063_p5, %p2418_p8 }
  0xab   : > { %p2072_p11 = por %p2071_p10, %p2070_p3 }
  0xac   : > { %p2066_p9 = pneg %p2065_p7 }
  0xae   : > { %p2073_p12 = pnand %p2072_p11, %p2066_p9 }
  0xb0   : > { %2076 = shalt.err (!%p2073_p12)
}
  0xb1   : > { %1761 = dma.hbm_to_vmem [thread:$0]  (!%p2402_p6), %s2827_s7, 16, %s459_s15, [#allocation18]  }
  0xb2   : > { %s2260_s30 = smov [#allocation22]   ;;  %s2077_s0 = scalar_lea.hbm %s2832_s12, 512 }
  0xb3   : > { %s490_s24 = sshll.u32 %s2260_s30, 4  ;;  %p2078_p1 = scmp.ne.s32.totalorder %s2832_s12, %s2077_s0  ;;  %s491_s24 = int_to_ptr.vmem [resolvable:$true] %s490_s24 }
  0xb4   : > { %p2084_p0 = scmp.lt.u32.totalorder %s2077_s0, %s2832_s12 }
  0xb5   : > { %p2080_p4 = pnand %p2078_p1, %p2418_p8 }
  0xb7   : > { %p2081_p13 = pneg %p2080_p4 }
  0xb9   : > { %p2086_p2 = pnand %p2084_p0, %p2081_p13 }
  0xbb   : > { %2089 = shalt.err (!%p2086_p2)
}
  0xbc   : > { %s2090_s15 = scalar_lea.vmem %s491_s24, 512  ;;  %p2098_p3 = scmp.lt.s32.totalorder %s491_s24, %s491_s24 }
  0xbd   : > { %p2091_p5 = scmp.ne.s32.totalorder %s491_s24, %s2090_s15  ;;  %p2099_p10 = scmp.lt.s32.totalorder %s2090_s15, %s2090_s15 }
  0xbf   : > { %p2093_p7 = pnand %p2091_p5, %p2418_p8  ;;  %p2100_p11 = por %p2099_p10, %p2098_p3 }
  0xc1   : > { %p2094_p9 = pneg %p2093_p7 }
  0xc3   : > { %p2101_p12 = pnand %p2100_p11, %p2094_p9 }
  0xc5   : > { %2104 = shalt.err (!%p2101_p12)
}
  0xc6   : > { %1767 = dma.hbm_to_vmem [thread:$0]  (!%p2402_p6), %s2832_s12, 512, %s491_s24, [#allocation21], %s2854_s9, %s2854_s9, %s2855_s17  }
  0xc7   : > { %s2590_s29 = sadd.s32 1, %s2249_s23   ;;  %s86_s27 = sadd.s32 1, %s2245_s22 }
  0xc8   : > { %s83_s30 = ssub.s32 %s2249_s23, %s2590_s29  ;;  %p93_p8 = scmp.ne.s32.totalorder %s2245_s22, %s2241_s21 }
  0xc9   : > { %p84_p1 = scmp.eq.s32.totalorder %s83_s30, 0  ;;  %p94_p4 = scmp.eq.s32.totalorder %s2249_s23, 0 }
  0xca   : > { %p99_p13 = scmp.ne.s32.totalorder %s2241_s21, %s2237_s20  ;;  %p1780_p0 = scmp.lt.s32.totalorder %s2249_s23, 2 }
  0xcb   : > { %s2602_s28 = scalar_select %p84_p1, %s2245_s22, %s86_s27  }
  0xcc   : > { %p95_p2 = por %p94_p4, %p93_p8  ;;  %p2856_p5 = scmp.eq.s32.totalorder %s2386_s25, 0 }
  0xcd   : > { %s507_s0 = sand.u32 1, %s2249_s23   ;;  %s509_s9 = sand.u32 1, %s2245_s22  }
  0xce   : > { %p2606_p7 = por %p2856_p5, %p99_p13  ;;  %s1565_s17 = sshll.u32 %s509_s9, 3 }
  0xcf   : > { %s1599_s24 = sshll.u32 %s2249_s23, 7  ;;  %s511_s20 = scalar_lea.vmem [#allocation11], %s1565_s17 }
  0xd0   : > { %s2616_s8 = scalar_lea.hbm %s2822_s2, %s1599_s24  ;;  %s518_s19 = sshll.u32 %s511_s20, 4  ;;  %s2618_s19 = int_to_ptr.vmem [resolvable:$true] %s518_s19 }
  0xd1   : > { %p2620_p6 = pnand %p1780_p0, %p95_p2  ;;  %s2624_s23 = scalar_lea.sflag [#allocation12], %s507_s0 }
  0xd2   : > { %s2105_s14 = scalar_lea.hbm %s2616_s8, 128  ;;  %s2110_s30 = scalar_lea.hbm %s2822_s2, 256 }
  0xd3   : > { %p2106_p9 = scmp.ne.s32.totalorder %s2616_s8, %s2105_s14  ;;  %p2107_p3 = pneg %p2620_p6 }
  0xd4   : > { %p2111_p12 = scmp.lt.u32.totalorder %s2616_s8, %s2822_s2  ;;  %p2112_p8 = scmp.lt.u32.totalorder %s2110_s30, %s2105_s14 }
  0xd5   : > { %p2108_p10 = pnand %p2107_p3, %p2106_p9  ;;  %p2114_p4 = scmp.lt.u32.totalorder %s2105_s14, %s2616_s8 }
  0xd6   : > { %p2113_p1 = por %p2112_p8, %p2111_p12 }
  0xd7   : > { %p2109_p11 = pneg %p2108_p10 }
  0xd8   : > { %p2115_p13 = por %p2114_p4, %p2113_p1 }
  0xda   : > { %p2116_p0 = pnand %p2115_p13, %p2109_p11 }
  0xdc   : > { %2119 = shalt.err (!%p2116_p0)
}
  0xdd   : > { %s2120_s0 = scalar_lea.vmem %s2618_s19, 128  ;;  %s2261_s24 = smov [#allocation11]  }
  0xde   : > { %p2121_p2 = scmp.ne.s32.totalorder %s2618_s19, %s2120_s0  ;;  %s2125_s16 = sshll.u32 %s2261_s24, 4  ;;  %s2126_s16 = int_to_ptr.vmem [resolvable:$false] %s2125_s16 }
  0xdf   : > { %s2127_s18 = scalar_lea.vmem %s2126_s16, 256  ;;  %p2128_p10 = scmp.lt.s32.totalorder %s2618_s19, %s2126_s16 }
  0xe0   : > { %p2123_p5 = pnand %p2121_p2, %p2107_p3  ;;  %p2129_p12 = scmp.lt.s32.totalorder %s2127_s18, %s2120_s0 }
  0xe2   : > { %p2124_p9 = pneg %p2123_p5  ;;  %p2130_p8 = por %p2129_p12, %p2128_p10 }
  0xe4   : > { %p2131_p1 = pnand %p2130_p8, %p2124_p9 }
  0xe6   : > { %2134 = shalt.err (!%p2131_p1)
}
  0xe7   : > { %s2262_s20 = smov 32   ;;  %s2263_s14 = smov 2  }
  0xe8   : > { %1771 = dma.hbm_to_vmem [thread:$0]  (!%p2620_p6), %s2616_s8, 128, %s2618_s19, %s2624_s23, %s2262_s20, %s2262_s20, %s2263_s14  }
  0xe9   : > { %p2859_p3 = scmp.ne.s32.totalorder %s2851_s26, 0 }
  0xea   : > { %p2860_p11 = scmp.eq.s32.totalorder (!%p2859_p3), %s2386_s25, 0 }
  0xeb   : > { %530 = sbr.rel (%p2859_p3) target bundleno = 2328 (0x918), region = 76 }
  0xf2   : > { %2204 = dma.done.wait (%p2860_p11), [#allocation9], 32   ;;  %p2861_p4 = pmov %p2860_p11 }
  0xf3   : > { %s536_s13 = sand.u32 1, %s2386_s25   ;;  %s538_s27 = sand.u32 1, %s2241_s21  }
  0xf4   : > { %2206 = vsyncadd (%p2861_p4), [#allocation9], 4294967264  ;;  %s1570_s30 = sshll.u32 %s538_s27, 3  ;;  %s537_s9 = scalar_lea.sflag [#allocation12], %s536_s13 }
  0xf5   : > { %s2660_s17 = scalar_lea.vmem [#allocation11], %s1570_s30 }
  0xf6   : > { %2208 = dma.done.wait (%p2606_p7), %s537_s9, 128  }
  0xf7   : > { %2210 = vsyncadd (%p2606_p7), %s537_s9, 4294967168  ;;  %p2862_p6 = pmov %p2861_p4 }
  0xf8   : > { %p2863_p13 = pmov %p2861_p4 }
  0xf9   : > { %2212 = dma.done.wait (%p2862_p6), [#allocation12], 512  }
  0xfa   : > { %2214 = vsyncadd (%p2863_p13), [#allocation12], 4294966784  ;;  %p2864_p0 = pmov %p2861_p4 }
  0xfc   : > { %2216 = dma.done.wait (%p2864_p0), [#allocation15], 528   ;;  %p2865_p2 = pmov %p2864_p0 }
  0xfd   : > { %p2866_p5 = pmov %p2864_p0 }
  0xfe   : > { %2218 = vsyncadd (%p2865_p2), [#allocation15], 4294966768 }
  0xff   : > { %2220 = dma.done.wait (%p2866_p5), [#allocation18], 32   ;;  %p2867_p9 = pmov %p2864_p0 }
 0x100   : > { %p2868_p7 = pmov %p2864_p0 }
 0x101   : > { %2222 = vsyncadd (%p2867_p9), [#allocation18], 4294967264 }
 0x102   : > { %2224 = dma.done.wait (%p2868_p7), [#allocation21], 768   ;;  %p2869_p10 = pmov %p2864_p0 }
 0x103   : > { %p2870_p12 = scmp.ne.s32.totalorder %s2386_s25, 0 }
 0x104   : > { %2226 = vsyncadd (%p2869_p10), [#allocation21], 4294966528  ;;  %v621_v1 = vld [vmem:[#allocation13] sm:$0xff] (!%p2870_p12)  ;;  %v622_v2 = vld [vmem:[#allocation13 + $0x8] sm:$0xff] (!%p2870_p12)  ;;  %vm615_vm0 = vcmask (!%p2870_p12), 1024   ;;  %v2264_v4 = vmov (!%p2870_p12), 0.0|0.0  }
 0x105   : > { %614 = sbr.rel (%p2870_p12) target bundleno = 485 (0x1e5), region = 116  ;;  %v623_v3 = vld [vmem:[#allocation13 + $0x10] sm:$0xff] (!%p2870_p12)  ;;  %1674 = vmatprep.subr.bf16.mxu0 (!%p2870_p12), %v2264_v4  ;;  %v1675_v5 = vpack.c.bf16 (!%p2870_p12), %v622_v2, %v621_v1  ;;  %v624_v6 = vld [vmem:[#allocation13 + $0x18] sm:$0xff] (!%p2870_p12)  ;;  %v2265_v7 = vmov (!%p2870_p12), -inf   ;;  %v2266_v8 = vmov (!%p2870_p12), 0.0   ;;  %vm2267_vm1 = vmmov (!%p2870_p12), 0  }
 0x106   : > { %616 = vst.msk [vmem:[#allocation3] sm:$0x3] (!%p2870_p12), %vm615_vm0, %v2265_v7  ;;  %617 = vst.msk [vmem:[#allocation4] sm:$0x3] (!%p2870_p12), %vm615_vm0, %v2266_v8  ;;  %1631 = vmatprep.mubr.msk.f32.mxu0 (!%p2870_p12), %vm2267_vm1, %v2266_v8  ;;  %vm618_vm2 = vcmask (!%p2870_p12), 254976   ;;  %v1678_v9 = vpack.c.bf16 (!%p2870_p12), %v624_v6, %v623_v3  ;;  %s2871_s8 = sld [smem:[#allocation34_spill]] (!%p2870_p12) }
 0x107   : > { %1676 = vmatpush3.bf16.msra.mxu0 (!%p2870_p12), %v1675_v5  ;;  %619 = vst.msk [vmem:[#allocation5] sm:$0x3] (!%p2870_p12), %vm618_vm2, %v2266_v8  ;;  %vm632_vm3 = vcmask (!%p2870_p12), 261120   ;;  %v1579_v11 = vld [vmem:[#allocation14] ss:$0 sm:$0xff] (!%p2870_p12) }
 0x108   : > { %1677 = vmatprep.subr.bf16.mxu0 (!%p2870_p12), %v2264_v4 }
 0x10b   : > { %1679 = vmatpush3.bf16.msra.mxu0 (!%p2870_p12), %v1678_v9 }
 0x10c   : > { %v620_v10 = vld [vmem:[%s2871_s8] sm:$0x3] }
 0x10e   : > { %1632 = vmatmul.mubr.msk.f32.vlgmr.msra.gmra.mrb[0].mxu0 %vm632_vm3, %v620_v10 }
 0x1e1   : > { %v702_v12 = vpop.f32.mrb[0].mxu0 }
 0x1e2   : > { %v703_v13 = vadd.f32 %v1579_v11, %v702_v12  ;;  %v1633_v14 = vpop.f32.mrb[1].mxu0 }
 0x1e4   : > { %706 = vst.msk [vmem:[#allocation2] sm:$0x3] %vm618_vm2, %v703_v13 }
 0x1e5 PF: > { %v711_v15 = vld [vmem:[#allocation16] sm:$0xff]  ;;  %v712_v16 = vld [vmem:[#allocation16 + $0x8] sm:$0xff]  ;;  %v713_v17 = vld [vmem:[#allocation16 + $0x10] sm:$0xff]  ;;  %v731_v18 = vlaneseq  ;;  %v2268_v19 = vmov 0.0|0.0   ;;  %vm2269_vm4 = vmmov 0   ;;  %v2270_v22 = vmov 0.0  }
 0x1e6   : > { %1680 = vmatprep.subr.bf16.mxu0 %v2268_v19  ;;  %v1681_v20 = vpack.c.bf16 %v712_v16, %v711_v15  ;;  %v714_v21 = vld [vmem:[#allocation16 + $0x18] sm:$0xff]  ;;  %1642 = vmatprep.mubr.msk.f32.mxu0 %vm2269_vm4, %v2270_v22  ;;  %v2688_v23 = vld [vmem:[%s2660_s17] sm:$0x3]  ;;  %v2271_v28 = vmov 1983009808   ;;  %vm743_vm5 = vcmask 261120  }
 0x1e7   : > { %v2691_v24 = vld [vmem:[%s2660_s17 + $0x2] sm:$0x3]  ;;  %v2694_v25 = vld [vmem:[%s2660_s17 + $0x4] sm:$0x3]  ;;  %v2697_v26 = vld [vmem:[%s2660_s17 + $0x6] sm:$0x3]  ;;  %v1684_v27 = vpack.c.bf16 %v714_v21, %v713_v17  ;;  %v729_v29 = vunpack.c.l.s4 %v2271_v28 }
 0x1e8   : > { %1682 = vmatpush3.bf16.msra.mxu0 %v1681_v20  ;;  %v2700_v30 = vshrl.u32 %v731_v18, 7  ;;  %v726_v31 = vcombine.low %v2688_v23, %v2691_v24  ;;  %v727_v32 = vcombine.low %v2694_v25, %v2697_v26  ;;  %v2272_v38 = vmov 0   ;;  %v1581_v39 = vld [vmem:[#allocation17] ss:$0 sm:$0xff]  ;;  %v1583_v53 = vld [vmem:[#allocation19] ss:$0 sm:$0xff] }
 0x1e9   : > { %1683 = vmatprep.subr.bf16.mxu0 %v2268_v19  ;;  %v730_v33 = vunpack.c.0.s8 %v729_v29  ;;  %1855 = vset.pattern.permute.xlu0 %v2272_v38  ;;  %vm858_vm6 = vcmask 254976   ;;  %v1584_v2 = vld [vmem:[#allocation7] ss:$0 sm:$0xff]  ;;  %v891_v5 = vand.u32 127, %v731_v18  ;;  %s1585_s19 = sshll.u32 %s2386_s25, 2  ;;  %vm908_vm7 = vcmask 1041409  }
 0x1ea   : > { %vm910_vm8 = vcmask 1042434   ;;  %vm912_vm9 = vcmask 1043459   ;;  %vm916_vm10 = vcmask 11264   ;;  %s915_s15 = scalar_lea.vmem [#allocation6], %s1585_s19  ;;  %vm951_vm11 = vcmask 25600   ;;  %p1586_p8 = scmp.ne.s32.totalorder %s2386_s25, 1 }
 0x1eb   : > { %v733_v34 = vsub.s32 %v730_v33, %v2700_v30  ;;  %v816_v43 = vld [vmem:[#allocation2] sm:$0x3]  ;;  %v894_v7 = vsub.s32 %v891_v5, %v2700_v30  ;;  %vm973_vm12 = vcmask 1024   ;;  %v1121_v5 = vld [vmem:[#allocation20 + $0x8] sm:$0xff] (!%p1586_p8)  ;;  %vm2275_vm13 = vmmov (!%p1586_p8), 0   ;;  %s2872_s24 = sld [smem:[#allocation35_spill]] (!%p1586_p8) }
 0x1ec   : > { %1685 = vmatpush3.bf16.msra.mxu0 %v1684_v27  ;;  %v950_v27 = vld [vmem:[#allocation3] sm:$0x3]  ;;  %vm1122_vm14 = vcmask (!%p1586_p8), 130048   ;;  %s2873_s17 = sld [smem:[#allocation34_spill]] (!%p1586_p8)  ;;  %s2874_s8 = sld [smem:[#allocation37_spill]] (!%p1586_p8)  ;;  %vm1110_vm15 = vcmask (!%p1586_p8), 58368  }
 0x1ed   : > { %v734_v35 = vrot.slane %v726_v31, %v733_v34  ;;  %v741_v36 = vrot.slane %v727_v32, %v733_v34  ;;  %s2277_s19 = smov (!%p1586_p8), 64   ;;  %s2875_s16 = sld [smem:[#allocation36_spill]] (!%p1586_p8) }
 0x1ee   : > { %s2279_s18 = smov (!%p1586_p8), 96  }
 0x1ef   : > { %v742_v37 = vcombine.low %v734_v35, %v741_v36 }
 0x1f1   : > { %1643 = vmatmul.mubr.msk.f32.vlgmr.msra.gmra.mrb[0].mxu0 %vm743_vm5, %v742_v37 }
 0x2c4   : > { %v812_v40 = vpop.f32.mrb[0].mxu0 }
 0x2c5   : > { %v813_v41 = vadd.f32 %v1581_v39, %v812_v40  ;;  %v1644_v42 = vpop.f32.mrb[1].mxu0  ;;  %v1016_v39 = vsub.s32 0, %v2700_v30  ;;  %v1023_v40 = vsub.s32 1, %v2700_v30 }
 0x2c7   : > { %v818_v44 = vcombine.high %v813_v41, %v813_v41  ;;  %v825_v45 = vrot.slane %v813_v41, %v733_v34 }
 0x2c9   : > { %v832_v46 = vrot.slane %v818_v44, %v733_v34  ;;  %v833_v47 = vcombine.high %v825_v45, %v825_v45  ;;  %v839_v48 = vadd.f32 %v825_v45, %v816_v43  ;;  %v1030_v44 = vsub.s32 2, %v2700_v30 }
 0x2cb   : > { %v834_v49 = vcombine.high %v832_v46, %v832_v46  ;;  %v840_v50 = vadd.f32 %v833_v47, %v816_v43  ;;  %v841_v51 = vadd.f32 %v832_v46, %v816_v43  ;;  %1857 = vtanh.f32 %v839_v48 }
 0x2cc   : > { %v1037_v46 = vsub.s32 3, %v2700_v30 }
 0x2cd   : > { %v842_v52 = vadd.f32 %v834_v49, %v816_v43  ;;  %1859 = vtanh.f32 %v840_v50  ;;  %v967_v49 = vld [vmem:[#allocation4] sm:$0x3] }
 0x2ce   : > { %1861 = vtanh.f32 %v841_v51 }
 0x2cf   : > { %1863 = vtanh.f32 %v842_v52 }
 0x2d5   : > { %v1858_v54 = vpop.eup %1857 }
 0x2d6   : > { %v854_v55 = vmul.f32 %v1858_v54, %v1583_v53 }
 0x2d7   : > { %v1860_v56 = vpop.eup %1859 }
 0x2d8   : > { %v1862_v57 = vpop.eup %1861  ;;  %v859_v58 = vsel %vm858_vm6, %v854_v55, 0.0  ;;  %v855_v59 = vmul.f32 %v1860_v56, %v1583_v53 }
 0x2d9   : > { %v1864_v60 = vpop.eup %1863  ;;  %860 = vadd.xlane.f32.xlu0 %v859_v58  ;;  %v856_v61 = vmul.f32 %v1862_v57, %v1583_v53 }
 0x2da   : > { %v857_v63 = vmul.f32 %v1864_v60, %v1583_v53  ;;  %v862_v0 = vsel %vm858_vm6, %v855_v59, 0.0 }
 0x2db   : > { %v865_v62 = vsel %vm858_vm6, %v856_v61, 0.0 }
 0x2dc   : > { %866 = vadd.xlane.f32.xlu1 %v865_v62  ;;  %v868_v1 = vsel %vm858_vm6, %v857_v63, 0.0  ;;  %v975_v63 = vld [vmem:[#allocation5] sm:$0x3] }
 0x2dd   : > { %863 = vadd.xlane.f32.xlu0 %v862_v0 }
 0x2e0   : > { %869 = vadd.xlane.f32.xlu1 %v868_v1 }
 0x2f3   : > { %878 = vperm.xlu0 %1855, %v1584_v2  }
 0x366   : > { %v861_v3 = vpop.xlane.xlu0 %860 }
 0x369   : > { %v867_v4 = vpop.xlane.xlu1 %866 }
 0x36a   : > { %v864_v6 = vpop.xlane.xlu0 %863 }
 0x36d   : > { %v870_v8 = vpop.xlane.xlu1 %869 }
 0x372   : > { %v879_v9 = vpop.permute.xlu0 %878 }
 0x373   : > { %v881_v10 = vadd.f32 %v879_v9, %v861_v3  ;;  %v882_v11 = vadd.f32 %v879_v9, %v864_v6  ;;  %v883_v12 = vadd.f32 %v879_v9, %v867_v4  ;;  %v884_v13 = vadd.f32 %v879_v9, %v870_v8  ;;  %v1277_v8 = vld [vmem:[#allocation22] sm:$0xff] (!%p1586_p8)  ;;  %v1278_v9 = vld [vmem:[#allocation22 + $0x8] sm:$0xff] (!%p1586_p8) }
 0x374   : > { %v2273_v6 = vmov (!%p1586_p8), 0  }
 0x375   : > { %v895_v14 = vrot.slane %v881_v10, %v894_v7  ;;  %v899_v15 = vrot.slane %v882_v11, %v894_v7  ;;  %v903_v16 = vrot.slane %v883_v12, %v894_v7  ;;  %v907_v17 = vrot.slane %v884_v13, %v894_v7  ;;  %v1119_v11 = vld [vmem:[#allocation8] sm:$0x3] (!%p1586_p8)  ;;  %v1115_v13 = vld [vmem:[%s2872_s24] sm:$0xff] (!%p1586_p8) }
 0x376   : > { %v2274_v7 = vmov (!%p1586_p8), 0.0|0.0   ;;  %v2276_v10 = vmov (!%p1586_p8), 0.0   ;;  %v1696_v12 = vpack.c.bf16 (!%p1586_p8), %v1278_v9, %v1277_v8 }
 0x377   : > { %v909_v19 = vsel %vm908_vm7, %v899_v15, %v895_v14  ;;  %1686 = vmatprep.subr.bf16.mxu0 (!%p1586_p8), %v2274_v7  ;;  %1649 = vmatprep.mubr.msk.f32.mxu0 (!%p1586_p8), %vm2275_vm13, %v2276_v10  ;;  %v1116_v14 = vld [vmem:[%s2872_s24 + $0x8] sm:$0xff] (!%p1586_p8)  ;;  %v1117_v15 = vld [vmem:[%s2872_s24 + $0x10] sm:$0xff] (!%p1586_p8) }
 0x378   : > { %v911_v18 = vsel %vm910_vm8, %v903_v16, %v909_v19  ;;  %1689 = vmatprep.subr.bf16.mxu1 (!%p1586_p8), %v2274_v7  ;;  %1660 = vmatprep.mubr.msk.f32.mxu1 (!%p1586_p8), %vm2275_vm13, %v2276_v10  ;;  %v1279_v16 = vld [vmem:[#allocation22 + $0x10] sm:$0xff] (!%p1586_p8)  ;;  %v1690_v19 = vpack.c.bf16 (!%p1586_p8), %v1116_v14, %v1115_v13 }
 0x379   : > { %v913_v20 = vsel %vm912_vm9, %v907_v17, %v911_v18  ;;  %v1280_v17 = vld [vmem:[#allocation22 + $0x18] sm:$0xff] (!%p1586_p8) }
 0x37a   : > { %918 = vxpose.xlu1.b32.start.end [1/1] (short) (narrow) %v913_v20, 8  ;;  %917 = vst.msk [vmem:[%s915_s15] sm:$0xf] %vm916_vm10, %v913_v20  ;;  %v1118_v18 = vld [vmem:[%s2872_s24 + $0x18] sm:$0xff] (!%p1586_p8)  ;;  %1691 = vmatpush3.bf16.msra.mxu1 (!%p1586_p8), %v1690_v19  ;;  %s2278_s15 = smov (!%p1586_p8), 32  }
 0x37b   : > { %v1693_v20 = vpack.c.bf16 (!%p1586_p8), %v1118_v18, %v1117_v15  ;;  %1692 = vmatprep.subr.bf16.mxu1 (!%p1586_p8), %v2274_v7 }
 0x37e   : > { %1694 = vmatpush3.bf16.msra.mxu1 (!%p1586_p8), %v1693_v20 }
 0x398   : > { %1856 = vset.pattern.permute.xlu1 %v2272_v38 }
 0x3fa   : > { %v934_v21 = vpop.trf.xlu1 }
 0x3fb   : > { %v952_v22 = vsel %vm951_vm11, %v934_v21, -inf }
 0x3fc   : > { %953 = vmax.xlane.f32.xlu0 %v952_v22 }
 0x489   : > { %v954_v28 = vpop.xlane.xlu0 %953 }
 0x48a   : > { %v955_v29 = vmax.f32 %v950_v27, %v954_v28 }
 0x48c   : > { %v956_v31 = vsub.f32 %v950_v27, %v955_v29  ;;  %1055 = vst.msk [vmem:[#allocation3] sm:$0x3] %vm973_vm12, %v955_v29  ;;  %961 = vperm.xlu1 %1856, %v955_v29   ;;  %v1114_v27 = vld [vmem:[%s2873_s17] sm:$0x3] (!%p1586_p8) }
 0x48e   : > { %v957_v32 = vmul.f32 1.442695, %v956_v31 }
 0x490   : > { %1865 = vpow2.f32 %v957_v32 }
 0x49a   : > { %v1866_v33 = vpop.eup %1865 }
 0x49b   : > { %978 = vperm.xlu1 %1856, %v1866_v33   ;;  %v968_v50 = vmul.f32 %v1866_v33, %v967_v49 }
 0x49f   : > { %1870 = vset.pattern.permute.xlu1 (!%p1586_p8), %v2273_v6 }
 0x50b   : > { %v962_v34 = vpop.permute.xlu1 %961 }
 0x50c   : > { %v964_v35 = vsub.f32 %v934_v21, %v962_v34  ;;  %v1699_v21 = vpack.c.bf16 (!%p1586_p8), %v1280_v17, %v1279_v16  ;;  %v1590_v34 = vld [vmem:[%s2874_s8] ss:$0 sm:$0xff] (!%p1586_p8) }
 0x50e   : > { %v965_v36 = vmul.f32 1.442695, %v964_v35 }
 0x510   : > { %1867 = vpow2.f32 %v965_v36 }
 0x51a   : > { %v1868_v37 = vpop.eup %1867  ;;  %v979_v48 = vpop.permute.xlu1 %978 }
 0x51b   : > { %982 = vxpose.xlu0.b32.start.end [1/1] (short) (narrow) %v1868_v37, 8  ;;  %v969_v38 = vsel %vm951_vm11, %v1868_v37, 0.0 }
 0x51c   : > { %970 = vadd.xlane.f32.xlu1 %v969_v38 }
 0x544   : > { %1869 = vset.pattern.permute.xlu0 (!%p1586_p8), %v2273_v6 }
 0x59b   : > { %v998_v41 = vpop.trf.xlu0 }
 0x59c   : > { %v1017_v42 = vrot.slane %v998_v41, %v1016_v39  ;;  %v1024_v43 = vrot.slane %v998_v41, %v1023_v40  ;;  %v1031_v45 = vrot.slane %v998_v41, %v1030_v44  ;;  %v1038_v47 = vrot.slane %v998_v41, %v1037_v46  ;;  %v1589_v39 = vld [vmem:[%s2875_s16] ss:$0 sm:$0xff] (!%p1586_p8) }
 0x59e   : > { %1019 = vbcast.lane.b32.xlu0 %v1017_v42, 256  ;;  %1026 = vbcast.lane.b32.xlu1 %v1024_v43, 256 }
 0x5a2   : > { %1033 = vbcast.lane.b32.xlu1 %v1031_v45, 256 }
 0x5a6   : > { %1040 = vbcast.lane.b32.xlu1 %v1038_v47, 256 }
 0x5a9   : > { %v971_v51 = vpop.xlane.xlu1 %970 }
 0x5aa   : > { %v972_v52 = vadd.f32 %v971_v51, %v968_v50 }
 0x5ac   : > { %974 = vst.msk [vmem:[#allocation4] sm:$0x3] %vm973_vm12, %v972_v52 }
 0x5b3   : > { %v1060_v4 = vld [vmem:[#allocation4] sm:$0x3] (!%p1586_p8) }
 0x5b4   : > { %1871 = vrcp.f32 (!%p1586_p8), %v1060_v4 }
 0x5be   : > { %v1872_v22 = vpop.eup (!%p1586_p8), %1871 }
 0x5bf   : > { %1106 = vperm.xlu0 (!%p1586_p8), %1869, %v1872_v22  }
 0x610   : > { %v1020_v53 = vpop.permute.xlu0 %1019  ;;  %v1027_v54 = vpop.permute.xlu1 %1026 }
 0x611   : > { %v1042_v55 = vmul.f32 %v1020_v53, %v2688_v23  ;;  %v1043_v56 = vmul.f32 %v1027_v54, %v2691_v24  ;;  %v981_v23 = vmul.f32 %v979_v48, %v975_v63  ;;  %v1095_v53 = vld [vmem:[#allocation3] sm:$0x3] (!%p1586_p8)  ;;  %v1062_v54 = vld [vmem:[#allocation6] sm:$0xff] (!%p1586_p8) }
 0x613   : > { %v1046_v58 = vsel %vm858_vm6, %v1042_v55, 0.0  ;;  %v1047_v30 = vsel %vm858_vm6, %v1043_v56, 0.0 }
 0x614   : > { %v1034_v57 = vpop.permute.xlu1 %1033  ;;  %v1048_v61 = vadd.f32 %v1047_v30, %v1046_v58 }
 0x615   : > { %v1044_v59 = vmul.f32 %v1034_v57, %v2694_v25  ;;  %v1120_v25 = vld [vmem:[#allocation20] sm:$0xff] (!%p1586_p8) }
 0x617   : > { %v1049_v60 = vsel %vm858_vm6, %v1044_v59, 0.0 }
 0x618   : > { %v1041_v62 = vpop.permute.xlu1 %1040  ;;  %v1050_v1 = vadd.f32 %v1049_v60, %v1048_v61 }
 0x619   : > { %v1045_v0 = vmul.f32 %v1041_v62, %v2697_v26  ;;  %v1687_v26 = vpack.c.bf16 (!%p1586_p8), %v1121_v5, %v1120_v25 }
 0x61a   : > { %1059 = sbr.rel (%p1586_p8) target bundleno = 2268 (0x8dc), region = 120 }
 0x61b   : > { %v1051_v2 = vsel %vm858_vm6, %v1045_v0, 0.0  ;;  %1688 = vmatpush3.bf16.msra.mxu0 (!%p1586_p8), %v1687_v26 }
 0x61c   : > { %v1052_v3 = vadd.f32 %v1051_v2, %v1050_v1  ;;  %1695 = vmatprep.subr.bf16.mxu0 (!%p1586_p8), %v2274_v7 }
 0x61e   : > { %v1053_v24 = vadd.f32 %v1052_v3, %v981_v23  ;;  %1650 = vmatmul.mubr.msk.f32.vlgmr.msra.gmra.mrb[0].mxu0 (!%p1586_p8), %vm1122_vm14, %v1119_v11 }
 0x61f   : > { %1697 = vmatpush3.bf16.msra.mxu0 (!%p1586_p8), %v1696_v12  ;;  %1671 = vmatprep.mubr.msk.f32.mxu0 (!%p1586_p8), %vm2275_vm13, %v2276_v10 }
 0x620   : > { %1054 = vst.msk [vmem:[#allocation5] sm:$0x3] %vm858_vm6, %v1053_v24  ;;  %1698 = vmatprep.subr.bf16.mxu0 (!%p1586_p8), %v2274_v7 }
 0x623   : > { %1700 = vmatpush3.bf16.msra.mxu0 %v1699_v21 }
 0x626   : > { %1672 = vmatmul.mubr.msk.f32.vlgmr.msra.gmra.mrb[2].mxu0 %vm743_vm5, %v1114_v27 }
 0x627   : > { %v1112_v28 = vld [vmem:[#allocation5] sm:$0x3] }
 0x63e   : > { %v1107_v29 = vpop.permute.xlu0 %1106 }
 0x63f   : > { %v1113_v31 = vmul.f32 %v1112_v28, %v1107_v29 }
 0x641   : > { %1661 = vmatmul.mubr.msk.f32.vlgmr.msra.gmra.mrb[0].mxu1 %vm743_vm5, %v1113_v31 }
 0x6f1   : > { %v1192_v32 = vpop.f32.mrb[0].mxu0 }
 0x6f2   : > { %v1651_v33 = vpop.f32.mrb[1].mxu0 }
 0x6f9   : > { %v1357_v35 = vpop.f32.mrb[2].mxu0 }
 0x6fa   : > { %v1358_v36 = vadd.f32 %v1590_v34, %v1357_v35  ;;  %v1673_v37 = vpop.f32.mrb[3].mxu0 }
 0x6fc   : > { %1369 = vrot.lane.b32.xlu0 %v1358_v36, %s2277_s19 }
 0x700   : > { %1385 = vrot.lane.b32.xlu0 %v1114_v27, %s2278_s15 }
 0x714   : > { %v1265_v38 = vpop.f32.mrb[0].mxu1 }
 0x715   : > { %v1266_v40 = vadd.f32 %v1265_v38, %v1192_v32  ;;  %v1662_v41 = vpop.f32.mrb[1].mxu1 }
 0x717   : > { %v1276_v42 = vadd.f32 %v1589_v39, %v1266_v40 }
 0x719   : > { %v1361_v43 = vadd.f32 %v1358_v36, %v1276_v42 }
 0x71b   : > { %v1592_v44 = vmul.f32 -1.442695, %v1361_v43 }
 0x71d   : > { %1873 = vpow2.f32 %v1592_v44 }
 0x727   : > { %v1874_v45 = vpop.eup %1873 }
 0x728   : > { %v1365_v46 = vadd.f32 1.0, %v1874_v45 }
 0x72a   : > { %1875 = vrcp.f32 %v1365_v46 }
 0x734   : > { %v1876_v47 = vpop.eup %1875 }
 0x735   : > { %v1379_v56 = vsub.f32 1.0, %v1876_v47 }
 0x76e   : > { %v1370_v48 = vpop.permute.xlu0 %1369 }
 0x76f   : > { %v1372_v49 = vmul.f32 %v1876_v47, %v1370_v48 }
 0x771   : > { %1374 = vrot.lane.b32.xlu1 %v1372_v49, %s2277_s19 }
 0x772   : > { %v1386_v55 = vpop.permute.xlu0 %1385 }
 0x773   : > { %v1388_v58 = vmul.f32 %v1876_v47, %v1386_v55 }
 0x7e3   : > { %v1375_v50 = vpop.permute.xlu1 %1374 }
 0x7e4   : > { %v1377_v51 = vadd.f32 %v1375_v50, %v1276_v42 }
 0x7e6   : > { %1877 = vtanh.f32 %v1377_v51 }
 0x7f0   : > { %v1878_v52 = vpop.eup %1877 }
 0x7f1   : > { %1381 = vrot.lane.b32.xlu1 %v1878_v52, %s2279_s18 }
 0x7f5   : > { %1098 = vperm.xlu1 %1870, %v1095_v53  }
 0x81e   : > { %1063 = vxpose.xlu1.b32.start.end [1/1] (short) (narrow) %v1062_v54, 8 }
 0x863   : > { %v1382_v57 = vpop.permute.xlu1 %1381 }
 0x864   : > { %v1384_v30 = vmul.f32 %v1382_v57, %v1379_v56 }
 0x866   : > { %v1389_v59 = vadd.f32 %v1388_v58, %v1384_v30 }
 0x868   : > { %1391 = vrot.lane.b32.xlu0 %v1389_v59, %s2279_s18 }
 0x874   : > { %v1099_v60 = vpop.permute.xlu1 %1098 }
 0x89e   : > { %v1079_v61 = vpop.trf.xlu1 }
 0x89f   : > { %v1101_v62 = vsub.f32 %v1079_v61, %v1099_v60 }
 0x8a1   : > { %v1102_v63 = vmul.f32 1.442695, %v1101_v62 }
 0x8a3   : > { %1879 = vpow2.f32 %v1102_v63 }
 0x8ad   : > { %v1880_v0 = vpop.eup %1879 }
 0x8ae   : > { %v1109_v1 = vmul.f32 %v1880_v0, %v1107_v29 }
 0x8b0   : > { %1111 = vst.msk [vmem:[#allocation24] sm:$0x3] %vm1110_vm15, %v1109_v1 }
 0x8da   : > { %v1392_v2 = vpop.permute.xlu0 %1391 }
 0x8db   : > { %1394 = vst.msk [vmem:[#allocation23] sm:$0x3] %vm858_vm6, %v1392_v2 }
 0x8dc PF: > { %p1789_p1 = scmp.eq.s32.totalorder %s2386_s25, 1  ;;  %s2280_s20 = smov [#allocation23]  }
 0x8dd   : > { %s1402_s14 = sshll.u32 %s2280_s20, 4  ;;  %s2281_s13 = smov [#allocation24]   ;;  %s1403_s14 = int_to_ptr.vmem [resolvable:$true] %s1402_s14 }
 0x8de   : > { %s1413_s27 = sshll.u32 %s2281_s13, 4  ;;  %s2135_s30 = scalar_lea.vmem %s1403_s14, 32  ;;  %s1414_s27 = int_to_ptr.vmem [resolvable:$true] %s1413_s27 }
 0x8df   : > { %p2136_p3 = scmp.ne.s32.totalorder %s1403_s14, %s2135_s30  ;;  %p2142_p6 = scmp.lt.s32.totalorder %s1403_s14, %s1403_s14 }
 0x8e0   : > { %p2143_p13 = scmp.lt.s32.totalorder %s2135_s30, %s2135_s30 }
 0x8e1   : > { %p2137_p11 = pnand %p2136_p3, %p1789_p1 }
 0x8e2   : > { %p2144_p0 = por %p2143_p13, %p2142_p6 }
 0x8e3   : > { %p2138_p4 = pneg %p2137_p11 }
 0x8e5   : > { %p2145_p2 = pnand %p2144_p0, %p2138_p4 }
 0x8e7   : > { %2148 = shalt.err (!%p2145_p2)
}
 0x8e8   : > { %s2876_s26 = sld [smem:[#allocation38_spill]] }
 0x8ee   : > { %s2149_s11 = scalar_lea.hbm %s2876_s26, 32 }
 0x8ef   : > { %p2150_p5 = scmp.ne.s32.totalorder %s2876_s26, %s2149_s11  ;;  %p2155_p10 = scmp.lt.u32.totalorder %s2149_s11, %s2876_s26 }
 0x8f1   : > { %p2151_p9 = pnand %p2150_p5, %p1789_p1 }
 0x8f3   : > { %p2152_p7 = pneg %p2151_p9 }
 0x8f5   : > { %p2157_p12 = pnand %p2155_p10, %p2152_p7 }
 0x8f7   : > { %2160 = shalt.err (!%p2157_p12)
}
 0x8f8   : > { %1736 = dma.vmem_to_hbm [thread:$0]  (%p1789_p1), %s1403_s14, 32, %s2876_s26, [#allocation10]  }
 0x8f9   : > { %s2161_s18 = scalar_lea.vmem %s1414_s27, 32  ;;  %p2168_p4 = scmp.lt.s32.totalorder %s1414_s27, %s1414_s27 }
 0x8fa   : > { %p2162_p8 = scmp.ne.s32.totalorder %s1414_s27, %s2161_s18  ;;  %p2169_p6 = scmp.lt.s32.totalorder %s2161_s18, %s2161_s18 }
 0x8fc   : > { %p2163_p3 = pnand %p2162_p8, %p1789_p1  ;;  %p2170_p13 = por %p2169_p6, %p2168_p4 }
 0x8fe   : > { %p2164_p11 = pneg %p2163_p3 }
 0x900   : > { %p2171_p0 = pnand %p2170_p13, %p2164_p11 }
 0x902   : > { %2174 = shalt.err (!%p2171_p0)
}
 0x903   : > { %s2877_s30 = sld [smem:[#allocation39_spill]] }
 0x909   : > { %s2175_s9 = scalar_lea.hbm %s2877_s30, 32 }
 0x90a   : > { %p2176_p2 = scmp.ne.s32.totalorder %s2877_s30, %s2175_s9  ;;  %p2181_p7 = scmp.lt.u32.totalorder %s2175_s9, %s2877_s30 }
 0x90c   : > { %p2177_p5 = pnand %p2176_p2, %p1789_p1 }
 0x90e   : > { %p2178_p9 = pneg %p2177_p5 }
 0x910   : > { %p2183_p10 = pnand %p2181_p7, %p2178_p9 }
 0x912   : > { %2186 = shalt.err (!%p2183_p10)
}
 0x913   : > { %1738 = dma.vmem_to_hbm [thread:$0]  (%p1789_p1), %s1414_s27, 32, %s2877_s30, [#allocation25]  }
 0x914   : > { %2228 = dma.done.wait (%p1789_p1), [#allocation10], 32  }
 0x915   : > { %2230 = vsyncadd (%p1789_p1), [#allocation10], 4294967264 }
 0x916   : > { %2232 = dma.done.wait (%p1789_p1), [#allocation25], 32  }
 0x917   : > { %2234 = vsyncadd (%p1789_p1), [#allocation25], 4294967264 }
 0x918 PF: > { %p34_p12 = scmp.ge.s32.totalorder %s2590_s29, 4   ;;  %s2878_s20 = smov %s2241_s21 }
 0x919   : > { %s2879_s21 = smov %s2245_s22  ;;  %s2880_s22 = smov %s2602_s28 }
 0x91a   : > { %s2881_s23 = smov %s2590_s29  ;;  %36 = sbr.rel (!%p34_p12) target bundleno = 16 (0x10), region = 163 }
 0x921   :  { %1430 = vsyncpa [#allocation9], 1 }
 0x922   :  { %1432 = vsyncpa [#allocation9 + $0x1], 1 }
 0x923   :  { %1433 = vsyncpa [#allocation12], 1 }
 0x924   :  { %1435 = vsyncpa [#allocation12 + $0x1], 1 }
 0x925   :  { %1436 = vsyncpa [#allocation15], 1 }
 0x926   :  { %1437 = vsyncpa [#allocation18], 1 }
 0x927   :  { %1438 = vsyncpa [#allocation21], 1 }
 0x928   :  { %1439 = vsyncpa [#allocation10], 1 }
 0x929   :  { %1441 = vsyncpa [#allocation10 + $0x1], 1 }
 0x92a   :  { %1442 = vsyncpa [#allocation25], 1 }

</bundles_post_ra>
